<compile_context>
chip_gen: v7x
topology: tpu7x:2x2x1
jax: 0.10.0
libtpu: 0.0.40
codegen_flags: <defaults>
</compile_context>

<pallas_src>
import functools

import jax
import jax.numpy as jnp
from jax.experimental import pallas as pl
from jax.experimental.pallas import tpu as pltpu

NEG_SLOPE = 0.01                                  # nn.LeakyReLU default negative_slope
MASK_VAL = float(jnp.finfo(jnp.float32).min)      # finite sentinel for the masked max


def _leaky_relu(x):
    return jnp.where(x >= 0, x, NEG_SLOPE * x)


def _full_spec(shape):
    nd = len(shape)
    return pl.BlockSpec(shape, lambda i, _nd=nd: (0,) * _nd)


# ----------------------------------------------------------------------------
# Single fused kernel: 2 GCN branches + 4 descriptor branches + final FC.
# The final FC is computed as an accumulation of per-branch partial dots
# against static row-slices of fw (no concat of the six (B, C) results).
# ----------------------------------------------------------------------------
def fused_forward_kernel(gw_ref, gcb_ref, gfcw_ref, bias6_ref, dw_ref, fw_ref, fb_ref,
                         adj1_ref, x1_ref, pool1_ref,
                         adj2_ref, x2_ref, pool2_ref,
                         m1s_ref, m1f_ref, m2s_ref, m2f_ref,
                         l1s_ref, l1f_ref, l2s_ref, l2f_ref,
                         out_ref):
    C = gfcw_ref.shape[2]
    n_out = fw_ref.shape[1]
    B, L, D = m1s_ref.shape

    # accumulator initialised with the final-FC bias; branch partials added below
    acc = jnp.broadcast_to(fb_ref[...], (B, n_out)).astype(jnp.float32)

    # ---- GCN branches: GCNConv -> LeakyReLU -> global_mean_pool -> fc -> LeakyReLU
    adj_refs = (adj1_ref, adj2_ref)
    x_refs = (x1_ref, x2_ref)
    pool_refs = (pool1_ref, pool2_ref)
    for p in range(2):
        xw = jnp.dot(x_refs[p][...], gw_ref[p], preferred_element_type=jnp.float32)
        h = jnp.dot(adj_refs[p][...], xw, preferred_element_type=jnp.float32) + gcb_ref[p]
        h = _leaky_relu(h)
        # pool matrix already carries the 1/count scaling -> mean pool in one dot
        pooled = jnp.dot(pool_refs[p][...], h, preferred_element_type=jnp.float32)
        y = _leaky_relu(
            jnp.dot(pooled, gfcw_ref[p], preferred_element_type=jnp.float32) + bias6_ref[p])
        acc = acc + jnp.dot(y, fw_ref[pl.ds(p * C, C), :],
                            preferred_element_type=jnp.float32)

    # ---- descriptor branches: Conv1d(k=1) -> masked AdaptiveMaxPool1d(1) ->
    #      (+bias, LeakyReLU) -- bias+activation after the max is exact, see header note.
    # Hoisted iotas: built ONCE and reused by all four branches.
    pos_l = jax.lax.broadcasted_iota(jnp.int32, (B, L, C), 1)
    b_idx = jax.lax.broadcasted_iota(jnp.int32, (B, L, C), 0)

    d_refs = (m1s_ref, m1f_ref, m2s_ref, m2f_ref)
    len_refs = (l1s_ref, l1f_ref, l2s_ref, l2f_ref)
    for d in range(4):
        xd = d_refs[d][...].reshape(B * L, D)                       # (B*L, D), K=80
        z = jnp.dot(xd, dw_ref[d], preferred_element_type=jnp.float32).reshape(B, L, C)
        # per-sample lengths come from SMEM scalars; broadcast with B selects
        lens = jnp.zeros((B, L, C), jnp.int32)
        for b in range(B):
            lens = jnp.where(b_idx == b, len_refs[d][b], lens)
        # NOTE: lengths are assumed to be in [1, L] (the PyTorch module errors
        # on empty sequences; lengths > L would silently truncate).
        z = jnp.where(pos_l < lens, z, MASK_VAL)                    # mask padded steps
        m = jnp.max(z, axis=1)                                      # (B, C)
        y = _leaky_relu(m + bias6_ref[2 + d])
        acc = acc + jnp.dot(y, fw_ref[pl.ds((2 + d) * C, C), :],
                            preferred_element_type=jnp.float32)

    out_ref[...] = acc


# ----------------------------------------------------------------------------
# One-time parameter preparation (runs ONCE, outside the per-call jitted path).
# ----------------------------------------------------------------------------
def prepare_params(p):
    return dict(
        gw=jnp.stack([p["pro1_conv_w"], p["pro2_conv_w"]]),                    # (2, F, F)
        gcb=jnp.stack([p["pro1_conv_b"], p["pro2_conv_b"]])[:, None, :],       # (2, 1, F)
        gfcw=jnp.stack([p["pro1_fc_w"], p["pro2_fc_w"]]),                      # (2, F, C)
        bias6=jnp.stack([p["pro1_fc_b"], p["pro2_fc_b"],
                         p["c1s_b"], p["c1f_b"],
                         p["c2s_b"], p["c2f_b"]])[:, None, :],                 # (6, 1, C)
        dw=jnp.stack([p["c1s_w"], p["c1f_w"], p["c2s_w"], p["c2f_w"]]),        # (4, D, C)
        fw=p["final_w"],                                                       # (6C, n_out)
        fb=p["final_b"][None, :],                                              # (1, n_out)
    )


# ----------------------------------------------------------------------------
# Per-call forward: zero wrapper XLA ops, one pallas_call.
# ----------------------------------------------------------------------------
def gcnn_desc_pool_forward(prep, pro1, pro2,
                           mas1_s, mas1_f, mas2_s, mas2_f,
                           len1_s, len1_f, len2_s, len2_f):
    B, L, D = mas1_s.shape
    n_out = prep["fw"].shape[1]

    vmem_args = (prep["gw"], prep["gcb"], prep["gfcw"], prep["bias6"],
                 prep["dw"], prep["fw"], prep["fb"],
                 pro1["adj"], pro1["x"], pro1["pool"],
                 pro2["adj"], pro2["x"], pro2["pool"],
                 mas1_s, mas1_f, mas2_s, mas2_f)
    smem_args = (len1_s.astype(jnp.int32), len1_f.astype(jnp.int32),
                 len2_s.astype(jnp.int32), len2_f.astype(jnp.int32))

    smem_spec = pl.BlockSpec(memory_space=pltpu.MemorySpace.SMEM)

    # NOTE: all operands together are < 1 MiB at these shapes, so everything sits
    # in VMEM for a single grid step.  For large graphs (N_nodes in the thousands)
    # `adj` must instead be tiled by row blocks (v7x VMEM is only 64 MiB).
    return pl.pallas_call(
        fused_forward_kernel,
        out_shape=jax.ShapeDtypeStruct((B, n_out), jnp.float32),
        grid=(1,),
        in_specs=[_full_spec(a.shape) for a in vmem_args] + [smem_spec] * len(smem_args),
        out_specs=_full_spec((B, n_out)),
        compiler_params=pltpu.CompilerParams(dimension_semantics=("arbitrary",)),
    )(*vmem_args, *smem_args)


# ----------------------------------------------------------------------------
# Deterministic setup
# ----------------------------------------------------------------------------
def build_graph(key, num_nodes, num_edges, batch_size, feat_dim):
    k1, k2, k3 = jax.random.split(key, 3)
    x = jax.random.normal(k1, (num_nodes, feat_dim), jnp.float32)
    src = jax.random.randint(k2, (num_edges,), 0, num_nodes)
    dst = jax.random.randint(k3, (num_edges,), 0, num_nodes)
    adj = jnp.zeros((num_nodes, num_nodes), jnp.float32).at[dst, src].set(1.0)
    adj = jnp.maximum(adj, adj.T)  # undirected graph
    adj = adj.at[jnp.arange(num_nodes), jnp.arange(num_nodes)].set(1.0)  # self loops
    dinv = 1.0 / jnp.sqrt(adj.sum(axis=1))
    a_hat = adj * dinv[:, None] * dinv[None, :]  # GCN symmetric normalization
    # contiguous node->graph assignment (pro_batch); mean-pool matrix with the
    # 1/count scaling folded in (removes the separate invc operand + multiply).
    nodes_per_graph = num_nodes // batch_size
    batch = jnp.repeat(jnp.arange(batch_size), nodes_per_graph)
    pool = (batch[None, :] == jnp.arange(batch_size)[:, None]).astype(jnp.float32)
    pool = pool / pool.sum(axis=1, keepdims=True)
    return dict(x=x, adj=a_hat, pool=pool)


def init_params(key, num_features_pro, output_dim, descriptor_dim, n_output):
    keys = jax.random.split(key, 16)
    s = 0.05
    p = {}
    # GCNConv weights stored as (in, out); bias (out,)
    p["pro1_conv_w"] = s * jax.random.normal(keys[0], (num_features_pro, num_features_pro), jnp.float32)
    p["pro1_conv_b"] = s * jax.random.normal(keys[1], (num_features_pro,), jnp.float32)
    p["pro2_conv_w"] = s * jax.random.normal(keys[2], (num_features_pro, num_features_pro), jnp.float32)
    p["pro2_conv_b"] = s * jax.random.normal(keys[3], (num_features_pro,), jnp.float32)
    # pro_fc1: nn.Linear(num_features_pro, output_dim) stored as (in, out)
    p["pro1_fc_w"] = s * jax.random.normal(keys[4], (num_features_pro, output_dim), jnp.float32)
    p["pro1_fc_b"] = s * jax.random.normal(keys[5], (output_dim,), jnp.float32)
    p["pro2_fc_w"] = s * jax.random.normal(keys[6], (num_features_pro, output_dim), jnp.float32)
    p["pro2_fc_b"] = s * jax.random.normal(keys[7], (output_dim,), jnp.float32)
    # Conv1d(descriptor_dim, output_dim, k=1): weight (C_out, D, 1) stored transposed (D, C_out)
    p["c1s_w"] = s * jax.random.normal(keys[8], (descriptor_dim, output_dim), jnp.float32)
    p["c1s_b"] = s * jax.random.normal(keys[9], (output_dim,), jnp.float32)
    p["c1f_w"] = s * jax.random.normal(keys[10], (descriptor_dim, output_dim), jnp.float32)
    p["c1f_b"] = s * jax.random.normal(keys[11], (output_dim,), jnp.float32)
    p["c2s_w"] = s * jax.random.normal(keys[12], (descriptor_dim, output_dim), jnp.float32)
    p["c2s_b"] = s * jax.random.normal(keys[13], (output_dim,), jnp.float32)
    p["c2f_w"] = s * jax.random.normal(keys[14], (descriptor_dim, output_dim), jnp.float32)
    p["c2f_b"] = s * jax.random.normal(keys[15], (output_dim,), jnp.float32)
    # final_fc: Linear(6*output_dim, n_output) stored as (in, out)
    kf1, kf2 = jax.random.split(jax.random.fold_in(key, 99))
    p["final_w"] = s * jax.random.normal(kf1, (6 * output_dim, n_output), jnp.float32)
    p["final_b"] = s * jax.random.normal(kf2, (n_output,), jnp.float32)
    return p


if __name__ == "__main__":
    # Small shapes consistent with the module's forward
    B = 2                 # batch of graphs / descriptor samples
    NUM_FEATURES_PRO = 128
    OUTPUT_DIM = 128
    DESCRIPTOR_DIM = 80
    N_OUTPUT = 1
    N_NODES = 16          # total nodes per protein batch graph
    N_EDGES = 32
    L_MAX = 8             # padded descriptor sequence length

    root = jax.random.PRNGKey(0)
    k_par, k_g1, k_g2, k_d1, k_d2, k_d3, k_d4 = jax.random.split(root, 7)

    params = init_params(k_par, NUM_FEATURES_PRO, OUTPUT_DIM, DESCRIPTOR_DIM, N_OUTPUT)
    prep = prepare_params(params)          # one-time stacking, outside the jitted path
    pro1 = build_graph(k_g1, N_NODES, N_EDGES, B, NUM_FEATURES_PRO)
    pro2 = build_graph(k_g2, N_NODES, N_EDGES, B, NUM_FEATURES_PRO)

    mas1_straight = jax.random.normal(k_d1, (B, L_MAX, DESCRIPTOR_DIM), jnp.float32)
    mas1_flipped = jax.random.normal(k_d2, (B, L_MAX, DESCRIPTOR_DIM), jnp.float32)
    mas2_straight = jax.random.normal(k_d3, (B, L_MAX, DESCRIPTOR_DIM), jnp.float32)
    mas2_flipped = jax.random.normal(k_d4, (B, L_MAX, DESCRIPTOR_DIM), jnp.float32)

    mas1_straight_lengths = jnp.array([5, 8], jnp.int32)
    mas1_flipped_lengths = jnp.array([8, 3], jnp.int32)
    mas2_straight_lengths = jnp.array([7, 6], jnp.int32)
    mas2_flipped_lengths = jnp.array([4, 8], jnp.int32)

    fwd = jax.jit(gcnn_desc_pool_forward)
    out = fwd(prep, pro1, pro2,
              mas1_straight, mas1_flipped, mas2_straight, mas2_flipped,
              mas1_straight_lengths, mas1_flipped_lengths,
              mas2_straight_lengths, mas2_flipped_lengths)
    out = jax.block_until_ready(out)
    assert out.shape == (B, N_OUTPUT), out.shape
    print("KERNEL_OK")
</pallas_src>

<mosaic_0001>
module attributes {stable_mosaic.version = 11 : i64} {
  func.func @fused_forward_kernel(%arg0: i32, %arg1: memref<2x128x128xf32, #tpu.memory_space<vmem>>, %arg2: memref<2x1x128xf32, #tpu.memory_space<vmem>>, %arg3: memref<2x128x128xf32, #tpu.memory_space<vmem>>, %arg4: memref<6x1x128xf32, #tpu.memory_space<vmem>>, %arg5: memref<4x80x128xf32, #tpu.memory_space<vmem>>, %arg6: memref<768x1xf32, #tpu.memory_space<vmem>>, %arg7: memref<1x1xf32, #tpu.memory_space<vmem>>, %arg8: memref<16x16xf32, #tpu.memory_space<vmem>>, %arg9: memref<16x128xf32, #tpu.memory_space<vmem>>, %arg10: memref<2x16xf32, #tpu.memory_space<vmem>>, %arg11: memref<16x16xf32, #tpu.memory_space<vmem>>, %arg12: memref<16x128xf32, #tpu.memory_space<vmem>>, %arg13: memref<2x16xf32, #tpu.memory_space<vmem>>, %arg14: memref<2x8x80xf32, #tpu.memory_space<vmem>>, %arg15: memref<2x8x80xf32, #tpu.memory_space<vmem>>, %arg16: memref<2x8x80xf32, #tpu.memory_space<vmem>>, %arg17: memref<2x8x80xf32, #tpu.memory_space<vmem>>, %arg18: memref<2xi32, #tpu.memory_space<smem>>, %arg19: memref<2xi32, #tpu.memory_space<smem>>, %arg20: memref<2xi32, #tpu.memory_space<smem>>, %arg21: memref<2xi32, #tpu.memory_space<smem>>, %arg22: memref<2x1xf32, #tpu.memory_space<vmem>>) attributes {dimension_semantics = [#tpu.dimension_semantics<arbitrary>], iteration_bounds = array<i64: 1>, scalar_prefetch = 0 : i64, scratch_operands = 0 : i64, tpu.core_type = #tpu.core_type<tc>, window_params = [{pipeline_mode = #tpu.pipeline_mode<synchronous>, transform_indices = @transform_0, window_bounds = array<i64: 2, 128, 128>}, {pipeline_mode = #tpu.pipeline_mode<synchronous>, transform_indices = @transform_1, window_bounds = array<i64: 2, 1, 128>}, {pipeline_mode = #tpu.pipeline_mode<synchronous>, transform_indices = @transform_2, window_bounds = array<i64: 2, 128, 128>}, {pipeline_mode = #tpu.pipeline_mode<synchronous>, transform_indices = @transform_3, window_bounds = array<i64: 6, 1, 128>}, {pipeline_mode = #tpu.pipeline_mode<synchronous>, transform_indices = @transform_4, window_bounds = array<i64: 4, 80, 128>}, {pipeline_mode = #tpu.pipeline_mode<synchronous>, transform_indices = @transform_5, window_bounds = array<i64: 768, 1>}, {pipeline_mode = #tpu.pipeline_mode<synchronous>, transform_indices = @transform_6, window_bounds = array<i64: 1, 1>}, {pipeline_mode = #tpu.pipeline_mode<synchronous>, transform_indices = @transform_7, window_bounds = array<i64: 16, 16>}, {pipeline_mode = #tpu.pipeline_mode<synchronous>, transform_indices = @transform_8, window_bounds = array<i64: 16, 128>}, {pipeline_mode = #tpu.pipeline_mode<synchronous>, transform_indices = @transform_9, window_bounds = array<i64: 2, 16>}, {pipeline_mode = #tpu.pipeline_mode<synchronous>, transform_indices = @transform_10, window_bounds = array<i64: 16, 16>}, {pipeline_mode = #tpu.pipeline_mode<synchronous>, transform_indices = @transform_11, window_bounds = array<i64: 16, 128>}, {pipeline_mode = #tpu.pipeline_mode<synchronous>, transform_indices = @transform_12, window_bounds = array<i64: 2, 16>}, {pipeline_mode = #tpu.pipeline_mode<synchronous>, transform_indices = @transform_13, window_bounds = array<i64: 2, 8, 80>}, {pipeline_mode = #tpu.pipeline_mode<synchronous>, transform_indices = @transform_14, window_bounds = array<i64: 2, 8, 80>}, {pipeline_mode = #tpu.pipeline_mode<synchronous>, transform_indices = @transform_15, window_bounds = array<i64: 2, 8, 80>}, {pipeline_mode = #tpu.pipeline_mode<synchronous>, transform_indices = @transform_16, window_bounds = array<i64: 2, 8, 80>}, {transform_indices = @transform_17, window_bounds = array<i64: 2>}, {transform_indices = @transform_18, window_bounds = array<i64: 2>}, {transform_indices = @transform_19, window_bounds = array<i64: 2>}, {transform_indices = @transform_20, window_bounds = array<i64: 2>}, {pipeline_mode = #tpu.pipeline_mode<synchronous>, transform_indices = @transform_21, window_bounds = array<i64: 2, 1>}]} {
    %c0 = arith.constant 0 : index
    %c0_0 = arith.constant 0 : index
    %0 = vector.load %arg7[%c0, %c0_0] : memref<1x1xf32, #tpu.memory_space<vmem>>, vector<1x1xf32>
    %1 = vector.shape_cast %0 : vector<1x1xf32> to vector<1x1xf32>
    %2 = vector.broadcast %1 : vector<1x1xf32> to vector<2x1xf32>
    %c0_1 = arith.constant 0 : index
    %c0_2 = arith.constant 0 : index
    %3 = vector.load %arg9[%c0_1, %c0_2] : memref<16x128xf32, #tpu.memory_space<vmem>>, vector<16x128xf32>
    %c0_3 = arith.constant 0 : index
    %c0_4 = arith.constant 0 : index
    %c0_5 = arith.constant 0 : index
    %4 = vector.load %arg1[%c0_3, %c0_4, %c0_5] : memref<2x128x128xf32, #tpu.memory_space<vmem>>, vector<1x128x128xf32>
    %5 = vector.shape_cast %4 : vector<1x128x128xf32> to vector<128x128xf32>
    %cst = arith.constant dense<0.000000e+00> : vector<16x128xf32>
    %6 = tpu.matmul %3, %5, %cst {dimension_numbers = #tpu.dot_dimension_numbers<[1], [0], [0], [1], [0, 0, 1, 1], [], []>} : vector<16x128xf32>, vector<128x128xf32>, vector<16x128xf32> -> vector<16x128xf32>
    %c0_6 = arith.constant 0 : index
    %c0_7 = arith.constant 0 : index
    %7 = vector.load %arg8[%c0_6, %c0_7] : memref<16x16xf32, #tpu.memory_space<vmem>>, vector<16x16xf32>
    %cst_8 = arith.constant dense<0.000000e+00> : vector<16x128xf32>
    %8 = tpu.matmul %7, %6, %cst_8 {dimension_numbers = #tpu.dot_dimension_numbers<[1], [0], [0], [1], [0, 0, 1, 1], [], []>} : vector<16x16xf32>, vector<16x128xf32>, vector<16x128xf32> -> vector<16x128xf32>
    %c0_9 = arith.constant 0 : index
    %c0_10 = arith.constant 0 : index
    %c0_11 = arith.constant 0 : index
    %9 = vector.load %arg2[%c0_9, %c0_10, %c0_11] : memref<2x1x128xf32, #tpu.memory_space<vmem>>, vector<1x1x128xf32>
    %10 = vector.shape_cast %9 : vector<1x1x128xf32> to vector<1x128xf32>
    %11 = vector.broadcast %10 : vector<1x128xf32> to vector<16x128xf32>
    %12 = arith.addf %8, %11 : vector<16x128xf32>
    %cst_12 = arith.constant 0.000000e+00 : f32
    %13 = vector.broadcast %cst_12 : f32 to vector<16x128xf32>
    %14 = arith.cmpf oge, %12, %13 : vector<16x128xf32>
    %cst_13 = arith.constant 0.00999999977 : f32
    %15 = vector.broadcast %cst_13 : f32 to vector<16x128xf32>
    %16 = arith.mulf %15, %12 : vector<16x128xf32>
    %17 = arith.select %14, %12, %16 : vector<16x128xi1>, vector<16x128xf32>
    %c0_14 = arith.constant 0 : index
    %c0_15 = arith.constant 0 : index
    %18 = vector.load %arg10[%c0_14, %c0_15] : memref<2x16xf32, #tpu.memory_space<vmem>>, vector<2x16xf32>
    %cst_16 = arith.constant dense<0.000000e+00> : vector<2x128xf32>
    %19 = tpu.matmul %18, %17, %cst_16 {dimension_numbers = #tpu.dot_dimension_numbers<[1], [0], [0], [1], [0, 0, 1, 1], [], []>} : vector<2x16xf32>, vector<16x128xf32>, vector<2x128xf32> -> vector<2x128xf32>
    %c0_17 = arith.constant 0 : index
    %c0_18 = arith.constant 0 : index
    %c0_19 = arith.constant 0 : index
    %20 = vector.load %arg3[%c0_17, %c0_18, %c0_19] : memref<2x128x128xf32, #tpu.memory_space<vmem>>, vector<1x128x128xf32>
    %21 = vector.shape_cast %20 : vector<1x128x128xf32> to vector<128x128xf32>
    %cst_20 = arith.constant dense<0.000000e+00> : vector<2x128xf32>
    %22 = tpu.matmul %19, %21, %cst_20 {dimension_numbers = #tpu.dot_dimension_numbers<[1], [0], [0], [1], [0, 0, 1, 1], [], []>} : vector<2x128xf32>, vector<128x128xf32>, vector<2x128xf32> -> vector<2x128xf32>
    %c0_21 = arith.constant 0 : index
    %c0_22 = arith.constant 0 : index
    %c0_23 = arith.constant 0 : index
    %23 = vector.load %arg4[%c0_21, %c0_22, %c0_23] : memref<6x1x128xf32, #tpu.memory_space<vmem>>, vector<1x1x128xf32>
    %24 = vector.shape_cast %23 : vector<1x1x128xf32> to vector<1x128xf32>
    %25 = vector.broadcast %24 : vector<1x128xf32> to vector<2x128xf32>
    %26 = arith.addf %22, %25 : vector<2x128xf32>
    %cst_24 = arith.constant 0.000000e+00 : f32
    %27 = vector.broadcast %cst_24 : f32 to vector<2x128xf32>
    %28 = arith.cmpf oge, %26, %27 : vector<2x128xf32>
    %cst_25 = arith.constant 0.00999999977 : f32
    %29 = vector.broadcast %cst_25 : f32 to vector<2x128xf32>
    %30 = arith.mulf %29, %26 : vector<2x128xf32>
    %31 = arith.select %28, %26, %30 : vector<2x128xi1>, vector<2x128xf32>
    %c0_26 = arith.constant 0 : index
    %c0_27 = arith.constant 0 : index
    %32 = vector.load %arg6[%c0_26, %c0_27] : memref<768x1xf32, #tpu.memory_space<vmem>>, vector<128x1xf32>
    %cst_28 = arith.constant dense<0.000000e+00> : vector<2x1xf32>
    %33 = tpu.matmul %31, %32, %cst_28 {dimension_numbers = #tpu.dot_dimension_numbers<[1], [0], [0], [1], [0, 0, 1, 1], [], []>} : vector<2x128xf32>, vector<128x1xf32>, vector<2x1xf32> -> vector<2x1xf32>
    %34 = arith.addf %2, %33 : vector<2x1xf32>
    %c0_29 = arith.constant 0 : index
    %c0_30 = arith.constant 0 : index
    %35 = vector.load %arg12[%c0_29, %c0_30] : memref<16x128xf32, #tpu.memory_space<vmem>>, vector<16x128xf32>
    %c1 = arith.constant 1 : index
    %c0_31 = arith.constant 0 : index
    %c0_32 = arith.constant 0 : index
    %36 = vector.load %arg1[%c1, %c0_31, %c0_32] : memref<2x128x128xf32, #tpu.memory_space<vmem>>, vector<1x128x128xf32>
    %37 = vector.shape_cast %36 : vector<1x128x128xf32> to vector<128x128xf32>
    %cst_33 = arith.constant dense<0.000000e+00> : vector<16x128xf32>
    %38 = tpu.matmul %35, %37, %cst_33 {dimension_numbers = #tpu.dot_dimension_numbers<[1], [0], [0], [1], [0, 0, 1, 1], [], []>} : vector<16x128xf32>, vector<128x128xf32>, vector<16x128xf32> -> vector<16x128xf32>
    %c0_34 = arith.constant 0 : index
    %c0_35 = arith.constant 0 : index
    %39 = vector.load %arg11[%c0_34, %c0_35] : memref<16x16xf32, #tpu.memory_space<vmem>>, vector<16x16xf32>
    %cst_36 = arith.constant dense<0.000000e+00> : vector<16x128xf32>
    %40 = tpu.matmul %39, %38, %cst_36 {dimension_numbers = #tpu.dot_dimension_numbers<[1], [0], [0], [1], [0, 0, 1, 1], [], []>} : vector<16x16xf32>, vector<16x128xf32>, vector<16x128xf32> -> vector<16x128xf32>
    %c1_37 = arith.constant 1 : index
    %c0_38 = arith.constant 0 : index
    %c0_39 = arith.constant 0 : index
    %41 = vector.load %arg2[%c1_37, %c0_38, %c0_39] : memref<2x1x128xf32, #tpu.memory_space<vmem>>, vector<1x1x128xf32>
    %42 = vector.shape_cast %41 : vector<1x1x128xf32> to vector<1x128xf32>
    %43 = vector.broadcast %42 : vector<1x128xf32> to vector<16x128xf32>
    %44 = arith.addf %40, %43 : vector<16x128xf32>
    %cst_40 = arith.constant 0.000000e+00 : f32
    %45 = vector.broadcast %cst_40 : f32 to vector<16x128xf32>
    %46 = arith.cmpf oge, %44, %45 : vector<16x128xf32>
    %cst_41 = arith.constant 0.00999999977 : f32
    %47 = vector.broadcast %cst_41 : f32 to vector<16x128xf32>
    %48 = arith.mulf %47, %44 : vector<16x128xf32>
    %49 = arith.select %46, %44, %48 : vector<16x128xi1>, vector<16x128xf32>
    %c0_42 = arith.constant 0 : index
    %c0_43 = arith.constant 0 : index
    %50 = vector.load %arg13[%c0_42, %c0_43] : memref<2x16xf32, #tpu.memory_space<vmem>>, vector<2x16xf32>
    %cst_44 = arith.constant dense<0.000000e+00> : vector<2x128xf32>
    %51 = tpu.matmul %50, %49, %cst_44 {dimension_numbers = #tpu.dot_dimension_numbers<[1], [0], [0], [1], [0, 0, 1, 1], [], []>} : vector<2x16xf32>, vector<16x128xf32>, vector<2x128xf32> -> vector<2x128xf32>
    %c1_45 = arith.constant 1 : index
    %c0_46 = arith.constant 0 : index
    %c0_47 = arith.constant 0 : index
    %52 = vector.load %arg3[%c1_45, %c0_46, %c0_47] : memref<2x128x128xf32, #tpu.memory_space<vmem>>, vector<1x128x128xf32>
    %53 = vector.shape_cast %52 : vector<1x128x128xf32> to vector<128x128xf32>
    %cst_48 = arith.constant dense<0.000000e+00> : vector<2x128xf32>
    %54 = tpu.matmul %51, %53, %cst_48 {dimension_numbers = #tpu.dot_dimension_numbers<[1], [0], [0], [1], [0, 0, 1, 1], [], []>} : vector<2x128xf32>, vector<128x128xf32>, vector<2x128xf32> -> vector<2x128xf32>
    %c1_49 = arith.constant 1 : index
    %c0_50 = arith.constant 0 : index
    %c0_51 = arith.constant 0 : index
    %55 = vector.load %arg4[%c1_49, %c0_50, %c0_51] : memref<6x1x128xf32, #tpu.memory_space<vmem>>, vector<1x1x128xf32>
    %56 = vector.shape_cast %55 : vector<1x1x128xf32> to vector<1x128xf32>
    %57 = vector.broadcast %56 : vector<1x128xf32> to vector<2x128xf32>
    %58 = arith.addf %54, %57 : vector<2x128xf32>
    %cst_52 = arith.constant 0.000000e+00 : f32
    %59 = vector.broadcast %cst_52 : f32 to vector<2x128xf32>
    %60 = arith.cmpf oge, %58, %59 : vector<2x128xf32>
    %cst_53 = arith.constant 0.00999999977 : f32
    %61 = vector.broadcast %cst_53 : f32 to vector<2x128xf32>
    %62 = arith.mulf %61, %58 : vector<2x128xf32>
    %63 = arith.select %60, %58, %62 : vector<2x128xi1>, vector<2x128xf32>
    %c128 = arith.constant 128 : index
    %c0_54 = arith.constant 0 : index
    %64 = vector.load %arg6[%c128, %c0_54] : memref<768x1xf32, #tpu.memory_space<vmem>>, vector<128x1xf32>
    %cst_55 = arith.constant dense<0.000000e+00> : vector<2x1xf32>
    %65 = tpu.matmul %63, %64, %cst_55 {dimension_numbers = #tpu.dot_dimension_numbers<[1], [0], [0], [1], [0, 0, 1, 1], [], []>} : vector<2x128xf32>, vector<128x1xf32>, vector<2x1xf32> -> vector<2x1xf32>
    %66 = arith.addf %34, %65 : vector<2x1xf32>
    %67 = tpu.iota {dimensions = array<i32: 1>} : vector<2x8x128xi32>
    %68 = tpu.iota {dimensions = array<i32: 0>} : vector<2x8x128xi32>
    %c0_56 = arith.constant 0 : index
    %c0_57 = arith.constant 0 : index
    %c0_58 = arith.constant 0 : index
    %69 = vector.load %arg14[%c0_56, %c0_57, %c0_58] : memref<2x8x80xf32, #tpu.memory_space<vmem>>, vector<2x8x80xf32>
    %70 = vector.shape_cast %69 : vector<2x8x80xf32> to vector<16x80xf32>
    %c0_59 = arith.constant 0 : index
    %c0_60 = arith.constant 0 : index
    %c0_61 = arith.constant 0 : index
    %71 = vector.load %arg5[%c0_59, %c0_60, %c0_61] : memref<4x80x128xf32, #tpu.memory_space<vmem>>, vector<1x80x128xf32>
    %72 = vector.shape_cast %71 : vector<1x80x128xf32> to vector<80x128xf32>
    %cst_62 = arith.constant dense<0.000000e+00> : vector<16x128xf32>
    %73 = tpu.matmul %70, %72, %cst_62 {dimension_numbers = #tpu.dot_dimension_numbers<[1], [0], [0], [1], [0, 0, 1, 1], [], []>} : vector<16x80xf32>, vector<80x128xf32>, vector<16x128xf32> -> vector<16x128xf32>
    %74 = vector.shape_cast %73 : vector<16x128xf32> to vector<2x8x128xf32>
    %c0_i32 = arith.constant 0 : i32
    %75 = vector.broadcast %c0_i32 : i32 to vector<2x8x128xi32>
    %c0_i32_63 = arith.constant 0 : i32
    %76 = vector.broadcast %c0_i32_63 : i32 to vector<2x8x128xi32>
    %77 = arith.cmpi eq, %68, %76 : vector<2x8x128xi32>
    %c0_64 = arith.constant 0 : index
    %78 = memref.load %arg18[%c0_64] : memref<2xi32, #tpu.memory_space<smem>>
    %79 = vector.broadcast %78 : i32 to vector<2x8x128xi32>
    %80 = arith.select %77, %79, %75 : vector<2x8x128xi1>, vector<2x8x128xi32>
    %c1_i32 = arith.constant 1 : i32
    %81 = vector.broadcast %c1_i32 : i32 to vector<2x8x128xi32>
    %82 = arith.cmpi eq, %68, %81 : vector<2x8x128xi32>
    %c1_65 = arith.constant 1 : index
    %83 = memref.load %arg18[%c1_65] : memref<2xi32, #tpu.memory_space<smem>>
    %84 = vector.broadcast %83 : i32 to vector<2x8x128xi32>
    %85 = arith.select %82, %84, %80 : vector<2x8x128xi1>, vector<2x8x128xi32>
    %86 = arith.cmpi slt, %67, %85 : vector<2x8x128xi32>
    %cst_66 = arith.constant -3.40282347E+38 : f32
    %87 = vector.broadcast %cst_66 : f32 to vector<2x8x128xf32>
    %88 = arith.select %86, %74, %87 : vector<2x8x128xi1>, vector<2x8x128xf32>
    %cst_67 = arith.constant dense<0xFF800000> : vector<2x128xf32>
    %89 = vector.multi_reduction <maximumf>, %88, %cst_67 [1] : vector<2x8x128xf32> to vector<2x128xf32>
    %c2 = arith.constant 2 : index
    %c0_68 = arith.constant 0 : index
    %c0_69 = arith.constant 0 : index
    %90 = vector.load %arg4[%c2, %c0_68, %c0_69] : memref<6x1x128xf32, #tpu.memory_space<vmem>>, vector<1x1x128xf32>
    %91 = vector.shape_cast %90 : vector<1x1x128xf32> to vector<1x128xf32>
    %92 = vector.broadcast %91 : vector<1x128xf32> to vector<2x128xf32>
    %93 = arith.addf %89, %92 : vector<2x128xf32>
    %cst_70 = arith.constant 0.000000e+00 : f32
    %94 = vector.broadcast %cst_70 : f32 to vector<2x128xf32>
    %95 = arith.cmpf oge, %93, %94 : vector<2x128xf32>
    %cst_71 = arith.constant 0.00999999977 : f32
    %96 = vector.broadcast %cst_71 : f32 to vector<2x128xf32>
    %97 = arith.mulf %96, %93 : vector<2x128xf32>
    %98 = arith.select %95, %93, %97 : vector<2x128xi1>, vector<2x128xf32>
    %c256 = arith.constant 256 : index
    %c0_72 = arith.constant 0 : index
    %99 = vector.load %arg6[%c256, %c0_72] : memref<768x1xf32, #tpu.memory_space<vmem>>, vector<128x1xf32>
    %cst_73 = arith.constant dense<0.000000e+00> : vector<2x1xf32>
    %100 = tpu.matmul %98, %99, %cst_73 {dimension_numbers = #tpu.dot_dimension_numbers<[1], [0], [0], [1], [0, 0, 1, 1], [], []>} : vector<2x128xf32>, vector<128x1xf32>, vector<2x1xf32> -> vector<2x1xf32>
    %101 = arith.addf %66, %100 : vector<2x1xf32>
    %c0_74 = arith.constant 0 : index
    %c0_75 = arith.constant 0 : index
    %c0_76 = arith.constant 0 : index
    %102 = vector.load %arg15[%c0_74, %c0_75, %c0_76] : memref<2x8x80xf32, #tpu.memory_space<vmem>>, vector<2x8x80xf32>
    %103 = vector.shape_cast %102 : vector<2x8x80xf32> to vector<16x80xf32>
    %c1_77 = arith.constant 1 : index
    %c0_78 = arith.constant 0 : index
    %c0_79 = arith.constant 0 : index
    %104 = vector.load %arg5[%c1_77, %c0_78, %c0_79] : memref<4x80x128xf32, #tpu.memory_space<vmem>>, vector<1x80x128xf32>
    %105 = vector.shape_cast %104 : vector<1x80x128xf32> to vector<80x128xf32>
    %cst_80 = arith.constant dense<0.000000e+00> : vector<16x128xf32>
    %106 = tpu.matmul %103, %105, %cst_80 {dimension_numbers = #tpu.dot_dimension_numbers<[1], [0], [0], [1], [0, 0, 1, 1], [], []>} : vector<16x80xf32>, vector<80x128xf32>, vector<16x128xf32> -> vector<16x128xf32>
    %107 = vector.shape_cast %106 : vector<16x128xf32> to vector<2x8x128xf32>
    %c0_i32_81 = arith.constant 0 : i32
    %108 = vector.broadcast %c0_i32_81 : i32 to vector<2x8x128xi32>
    %c0_i32_82 = arith.constant 0 : i32
    %109 = vector.broadcast %c0_i32_82 : i32 to vector<2x8x128xi32>
    %110 = arith.cmpi eq, %68, %109 : vector<2x8x128xi32>
    %c0_83 = arith.constant 0 : index
    %111 = memref.load %arg19[%c0_83] : memref<2xi32, #tpu.memory_space<smem>>
    %112 = vector.broadcast %111 : i32 to vector<2x8x128xi32>
    %113 = arith.select %110, %112, %108 : vector<2x8x128xi1>, vector<2x8x128xi32>
    %c1_i32_84 = arith.constant 1 : i32
    %114 = vector.broadcast %c1_i32_84 : i32 to vector<2x8x128xi32>
    %115 = arith.cmpi eq, %68, %114 : vector<2x8x128xi32>
    %c1_85 = arith.constant 1 : index
    %116 = memref.load %arg19[%c1_85] : memref<2xi32, #tpu.memory_space<smem>>
    %117 = vector.broadcast %116 : i32 to vector<2x8x128xi32>
    %118 = arith.select %115, %117, %113 : vector<2x8x128xi1>, vector<2x8x128xi32>
    %119 = arith.cmpi slt, %67, %118 : vector<2x8x128xi32>
    %cst_86 = arith.constant -3.40282347E+38 : f32
    %120 = vector.broadcast %cst_86 : f32 to vector<2x8x128xf32>
    %121 = arith.select %119, %107, %120 : vector<2x8x128xi1>, vector<2x8x128xf32>
    %cst_87 = arith.constant dense<0xFF800000> : vector<2x128xf32>
    %122 = vector.multi_reduction <maximumf>, %121, %cst_87 [1] : vector<2x8x128xf32> to vector<2x128xf32>
    %c3 = arith.constant 3 : index
    %c0_88 = arith.constant 0 : index
    %c0_89 = arith.constant 0 : index
    %123 = vector.load %arg4[%c3, %c0_88, %c0_89] : memref<6x1x128xf32, #tpu.memory_space<vmem>>, vector<1x1x128xf32>
    %124 = vector.shape_cast %123 : vector<1x1x128xf32> to vector<1x128xf32>
    %125 = vector.broadcast %124 : vector<1x128xf32> to vector<2x128xf32>
    %126 = arith.addf %122, %125 : vector<2x128xf32>
    %cst_90 = arith.constant 0.000000e+00 : f32
    %127 = vector.broadcast %cst_90 : f32 to vector<2x128xf32>
    %128 = arith.cmpf oge, %126, %127 : vector<2x128xf32>
    %cst_91 = arith.constant 0.00999999977 : f32
    %129 = vector.broadcast %cst_91 : f32 to vector<2x128xf32>
    %130 = arith.mulf %129, %126 : vector<2x128xf32>
    %131 = arith.select %128, %126, %130 : vector<2x128xi1>, vector<2x128xf32>
    %c384 = arith.constant 384 : index
    %c0_92 = arith.constant 0 : index
    %132 = vector.load %arg6[%c384, %c0_92] : memref<768x1xf32, #tpu.memory_space<vmem>>, vector<128x1xf32>
    %cst_93 = arith.constant dense<0.000000e+00> : vector<2x1xf32>
    %133 = tpu.matmul %131, %132, %cst_93 {dimension_numbers = #tpu.dot_dimension_numbers<[1], [0], [0], [1], [0, 0, 1, 1], [], []>} : vector<2x128xf32>, vector<128x1xf32>, vector<2x1xf32> -> vector<2x1xf32>
    %134 = arith.addf %101, %133 : vector<2x1xf32>
    %c0_94 = arith.constant 0 : index
    %c0_95 = arith.constant 0 : index
    %c0_96 = arith.constant 0 : index
    %135 = vector.load %arg16[%c0_94, %c0_95, %c0_96] : memref<2x8x80xf32, #tpu.memory_space<vmem>>, vector<2x8x80xf32>
    %136 = vector.shape_cast %135 : vector<2x8x80xf32> to vector<16x80xf32>
    %c2_97 = arith.constant 2 : index
    %c0_98 = arith.constant 0 : index
    %c0_99 = arith.constant 0 : index
    %137 = vector.load %arg5[%c2_97, %c0_98, %c0_99] : memref<4x80x128xf32, #tpu.memory_space<vmem>>, vector<1x80x128xf32>
    %138 = vector.shape_cast %137 : vector<1x80x128xf32> to vector<80x128xf32>
    %cst_100 = arith.constant dense<0.000000e+00> : vector<16x128xf32>
    %139 = tpu.matmul %136, %138, %cst_100 {dimension_numbers = #tpu.dot_dimension_numbers<[1], [0], [0], [1], [0, 0, 1, 1], [], []>} : vector<16x80xf32>, vector<80x128xf32>, vector<16x128xf32> -> vector<16x128xf32>
    %140 = vector.shape_cast %139 : vector<16x128xf32> to vector<2x8x128xf32>
    %c0_i32_101 = arith.constant 0 : i32
    %141 = vector.broadcast %c0_i32_101 : i32 to vector<2x8x128xi32>
    %c0_i32_102 = arith.constant 0 : i32
    %142 = vector.broadcast %c0_i32_102 : i32 to vector<2x8x128xi32>
    %143 = arith.cmpi eq, %68, %142 : vector<2x8x128xi32>
    %c0_103 = arith.constant 0 : index
    %144 = memref.load %arg20[%c0_103] : memref<2xi32, #tpu.memory_space<smem>>
    %145 = vector.broadcast %144 : i32 to vector<2x8x128xi32>
    %146 = arith.select %143, %145, %141 : vector<2x8x128xi1>, vector<2x8x128xi32>
    %c1_i32_104 = arith.constant 1 : i32
    %147 = vector.broadcast %c1_i32_104 : i32 to vector<2x8x128xi32>
    %148 = arith.cmpi eq, %68, %147 : vector<2x8x128xi32>
    %c1_105 = arith.constant 1 : index
    %149 = memref.load %arg20[%c1_105] : memref<2xi32, #tpu.memory_space<smem>>
    %150 = vector.broadcast %149 : i32 to vector<2x8x128xi32>
    %151 = arith.select %148, %150, %146 : vector<2x8x128xi1>, vector<2x8x128xi32>
    %152 = arith.cmpi slt, %67, %151 : vector<2x8x128xi32>
    %cst_106 = arith.constant -3.40282347E+38 : f32
    %153 = vector.broadcast %cst_106 : f32 to vector<2x8x128xf32>
    %154 = arith.select %152, %140, %153 : vector<2x8x128xi1>, vector<2x8x128xf32>
    %cst_107 = arith.constant dense<0xFF800000> : vector<2x128xf32>
    %155 = vector.multi_reduction <maximumf>, %154, %cst_107 [1] : vector<2x8x128xf32> to vector<2x128xf32>
    %c4 = arith.constant 4 : index
    %c0_108 = arith.constant 0 : index
    %c0_109 = arith.constant 0 : index
    %156 = vector.load %arg4[%c4, %c0_108, %c0_109] : memref<6x1x128xf32, #tpu.memory_space<vmem>>, vector<1x1x128xf32>
    %157 = vector.shape_cast %156 : vector<1x1x128xf32> to vector<1x128xf32>
    %158 = vector.broadcast %157 : vector<1x128xf32> to vector<2x128xf32>
    %159 = arith.addf %155, %158 : vector<2x128xf32>
    %cst_110 = arith.constant 0.000000e+00 : f32
    %160 = vector.broadcast %cst_110 : f32 to vector<2x128xf32>
    %161 = arith.cmpf oge, %159, %160 : vector<2x128xf32>
    %cst_111 = arith.constant 0.00999999977 : f32
    %162 = vector.broadcast %cst_111 : f32 to vector<2x128xf32>
    %163 = arith.mulf %162, %159 : vector<2x128xf32>
    %164 = arith.select %161, %159, %163 : vector<2x128xi1>, vector<2x128xf32>
    %c512 = arith.constant 512 : index
    %c0_112 = arith.constant 0 : index
    %165 = vector.load %arg6[%c512, %c0_112] : memref<768x1xf32, #tpu.memory_space<vmem>>, vector<128x1xf32>
    %cst_113 = arith.constant dense<0.000000e+00> : vector<2x1xf32>
    %166 = tpu.matmul %164, %165, %cst_113 {dimension_numbers = #tpu.dot_dimension_numbers<[1], [0], [0], [1], [0, 0, 1, 1], [], []>} : vector<2x128xf32>, vector<128x1xf32>, vector<2x1xf32> -> vector<2x1xf32>
    %167 = arith.addf %134, %166 : vector<2x1xf32>
    %c0_114 = arith.constant 0 : index
    %c0_115 = arith.constant 0 : index
    %c0_116 = arith.constant 0 : index
    %168 = vector.load %arg17[%c0_114, %c0_115, %c0_116] : memref<2x8x80xf32, #tpu.memory_space<vmem>>, vector<2x8x80xf32>
    %169 = vector.shape_cast %168 : vector<2x8x80xf32> to vector<16x80xf32>
    %c3_117 = arith.constant 3 : index
    %c0_118 = arith.constant 0 : index
    %c0_119 = arith.constant 0 : index
    %170 = vector.load %arg5[%c3_117, %c0_118, %c0_119] : memref<4x80x128xf32, #tpu.memory_space<vmem>>, vector<1x80x128xf32>
    %171 = vector.shape_cast %170 : vector<1x80x128xf32> to vector<80x128xf32>
    %cst_120 = arith.constant dense<0.000000e+00> : vector<16x128xf32>
    %172 = tpu.matmul %169, %171, %cst_120 {dimension_numbers = #tpu.dot_dimension_numbers<[1], [0], [0], [1], [0, 0, 1, 1], [], []>} : vector<16x80xf32>, vector<80x128xf32>, vector<16x128xf32> -> vector<16x128xf32>
    %173 = vector.shape_cast %172 : vector<16x128xf32> to vector<2x8x128xf32>
    %c0_i32_121 = arith.constant 0 : i32
    %174 = vector.broadcast %c0_i32_121 : i32 to vector<2x8x128xi32>
    %c0_i32_122 = arith.constant 0 : i32
    %175 = vector.broadcast %c0_i32_122 : i32 to vector<2x8x128xi32>
    %176 = arith.cmpi eq, %68, %175 : vector<2x8x128xi32>
    %c0_123 = arith.constant 0 : index
    %177 = memref.load %arg21[%c0_123] : memref<2xi32, #tpu.memory_space<smem>>
    %178 = vector.broadcast %177 : i32 to vector<2x8x128xi32>
    %179 = arith.select %176, %178, %174 : vector<2x8x128xi1>, vector<2x8x128xi32>
    %c1_i32_124 = arith.constant 1 : i32
    %180 = vector.broadcast %c1_i32_124 : i32 to vector<2x8x128xi32>
    %181 = arith.cmpi eq, %68, %180 : vector<2x8x128xi32>
    %c1_125 = arith.constant 1 : index
    %182 = memref.load %arg21[%c1_125] : memref<2xi32, #tpu.memory_space<smem>>
    %183 = vector.broadcast %182 : i32 to vector<2x8x128xi32>
    %184 = arith.select %181, %183, %179 : vector<2x8x128xi1>, vector<2x8x128xi32>
    %185 = arith.cmpi slt, %67, %184 : vector<2x8x128xi32>
    %cst_126 = arith.constant -3.40282347E+38 : f32
    %186 = vector.broadcast %cst_126 : f32 to vector<2x8x128xf32>
    %187 = arith.select %185, %173, %186 : vector<2x8x128xi1>, vector<2x8x128xf32>
    %cst_127 = arith.constant dense<0xFF800000> : vector<2x128xf32>
    %188 = vector.multi_reduction <maximumf>, %187, %cst_127 [1] : vector<2x8x128xf32> to vector<2x128xf32>
    %c5 = arith.constant 5 : index
    %c0_128 = arith.constant 0 : index
    %c0_129 = arith.constant 0 : index
    %189 = vector.load %arg4[%c5, %c0_128, %c0_129] : memref<6x1x128xf32, #tpu.memory_space<vmem>>, vector<1x1x128xf32>
    %190 = vector.shape_cast %189 : vector<1x1x128xf32> to vector<1x128xf32>
    %191 = vector.broadcast %190 : vector<1x128xf32> to vector<2x128xf32>
    %192 = arith.addf %188, %191 : vector<2x128xf32>
    %cst_130 = arith.constant 0.000000e+00 : f32
    %193 = vector.broadcast %cst_130 : f32 to vector<2x128xf32>
    %194 = arith.cmpf oge, %192, %193 : vector<2x128xf32>
    %cst_131 = arith.constant 0.00999999977 : f32
    %195 = vector.broadcast %cst_131 : f32 to vector<2x128xf32>
    %196 = arith.mulf %195, %192 : vector<2x128xf32>
    %197 = arith.select %194, %192, %196 : vector<2x128xi1>, vector<2x128xf32>
    %c640 = arith.constant 640 : index
    %c0_132 = arith.constant 0 : index
    %198 = vector.load %arg6[%c640, %c0_132] : memref<768x1xf32, #tpu.memory_space<vmem>>, vector<128x1xf32>
    %cst_133 = arith.constant dense<0.000000e+00> : vector<2x1xf32>
    %199 = tpu.matmul %197, %198, %cst_133 {dimension_numbers = #tpu.dot_dimension_numbers<[1], [0], [0], [1], [0, 0, 1, 1], [], []>} : vector<2x128xf32>, vector<128x1xf32>, vector<2x1xf32> -> vector<2x1xf32>
    %200 = arith.addf %167, %199 : vector<2x1xf32>
    %c0_134 = arith.constant 0 : index
    %c0_135 = arith.constant 0 : index
    %201 = vector.load %arg22[%c0_134, %c0_135] : memref<2x1xf32, #tpu.memory_space<vmem>>, vector<2x1xf32>
    tpu.vector_store %arg22[%c0_134, %c0_135], %200 {strides = array<i32>} : memref<2x1xf32, #tpu.memory_space<vmem>>, vector<2x1xf32>,
    return
  }
  func.func @transform_0(%arg0: i32) -> (i32, i32, i32) {
    %c0_i32 = arith.constant 0 : i32
    %c0_i32_0 = arith.constant 0 : i32
    %c0_i32_1 = arith.constant 0 : i32
    %c0_i32_2 = arith.constant 0 : i32
    return %c0_i32, %c0_i32_0, %c0_i32_1 : i32, i32, i32
  }
  func.func @transform_1(%arg0: i32) -> (i32, i32, i32) {
    %c0_i32 = arith.constant 0 : i32
    %c0_i32_0 = arith.constant 0 : i32
    %c0_i32_1 = arith.constant 0 : i32
    %c0_i32_2 = arith.constant 0 : i32
    return %c0_i32, %c0_i32_0, %c0_i32_1 : i32, i32, i32
  }
  func.func @transform_2(%arg0: i32) -> (i32, i32, i32) {
    %c0_i32 = arith.constant 0 : i32
    %c0_i32_0 = arith.constant 0 : i32
    %c0_i32_1 = arith.constant 0 : i32
    %c0_i32_2 = arith.constant 0 : i32
    return %c0_i32, %c0_i32_0, %c0_i32_1 : i32, i32, i32
  }
  func.func @transform_3(%arg0: i32) -> (i32, i32, i32) {
    %c0_i32 = arith.constant 0 : i32
    %c0_i32_0 = arith.constant 0 : i32
    %c0_i32_1 = arith.constant 0 : i32
    %c0_i32_2 = arith.constant 0 : i32
    return %c0_i32, %c0_i32_0, %c0_i32_1 : i32, i32, i32
  }
  func.func @transform_4(%arg0: i32) -> (i32, i32, i32) {
    %c0_i32 = arith.constant 0 : i32
    %c0_i32_0 = arith.constant 0 : i32
    %c0_i32_1 = arith.constant 0 : i32
    %c0_i32_2 = arith.constant 0 : i32
    return %c0_i32, %c0_i32_0, %c0_i32_1 : i32, i32, i32
  }
  func.func @transform_5(%arg0: i32) -> (i32, i32) {
    %c0_i32 = arith.constant 0 : i32
    %c0_i32_0 = arith.constant 0 : i32
    %c0_i32_1 = arith.constant 0 : i32
    return %c0_i32, %c0_i32_0 : i32, i32
  }
  func.func @transform_6(%arg0: i32) -> (i32, i32) {
    %c0_i32 = arith.constant 0 : i32
    %c0_i32_0 = arith.constant 0 : i32
    %c0_i32_1 = arith.constant 0 : i32
    return %c0_i32, %c0_i32_0 : i32, i32
  }
  func.func @transform_7(%arg0: i32) -> (i32, i32) {
    %c0_i32 = arith.constant 0 : i32
    %c0_i32_0 = arith.constant 0 : i32
    %c0_i32_1 = arith.constant 0 : i32
    return %c0_i32, %c0_i32_0 : i32, i32
  }
  func.func @transform_8(%arg0: i32) -> (i32, i32) {
    %c0_i32 = arith.constant 0 : i32
    %c0_i32_0 = arith.constant 0 : i32
    %c0_i32_1 = arith.constant 0 : i32
    return %c0_i32, %c0_i32_0 : i32, i32
  }
  func.func @transform_9(%arg0: i32) -> (i32, i32) {
    %c0_i32 = arith.constant 0 : i32
    %c0_i32_0 = arith.constant 0 : i32
    %c0_i32_1 = arith.constant 0 : i32
    return %c0_i32, %c0_i32_0 : i32, i32
  }
  func.func @transform_10(%arg0: i32) -> (i32, i32) {
    %c0_i32 = arith.constant 0 : i32
    %c0_i32_0 = arith.constant 0 : i32
    %c0_i32_1 = arith.constant 0 : i32
    return %c0_i32, %c0_i32_0 : i32, i32
  }
  func.func @transform_11(%arg0: i32) -> (i32, i32) {
    %c0_i32 = arith.constant 0 : i32
    %c0_i32_0 = arith.constant 0 : i32
    %c0_i32_1 = arith.constant 0 : i32
    return %c0_i32, %c0_i32_0 : i32, i32
  }
  func.func @transform_12(%arg0: i32) -> (i32, i32) {
    %c0_i32 = arith.constant 0 : i32
    %c0_i32_0 = arith.constant 0 : i32
    %c0_i32_1 = arith.constant 0 : i32
    return %c0_i32, %c0_i32_0 : i32, i32
  }
  func.func @transform_13(%arg0: i32) -> (i32, i32, i32) {
    %c0_i32 = arith.constant 0 : i32
    %c0_i32_0 = arith.constant 0 : i32
    %c0_i32_1 = arith.constant 0 : i32
    %c0_i32_2 = arith.constant 0 : i32
    return %c0_i32, %c0_i32_0, %c0_i32_1 : i32, i32, i32
  }
  func.func @transform_14(%arg0: i32) -> (i32, i32, i32) {
    %c0_i32 = arith.constant 0 : i32
    %c0_i32_0 = arith.constant 0 : i32
    %c0_i32_1 = arith.constant 0 : i32
    %c0_i32_2 = arith.constant 0 : i32
    return %c0_i32, %c0_i32_0, %c0_i32_1 : i32, i32, i32
  }
  func.func @transform_15(%arg0: i32) -> (i32, i32, i32) {
    %c0_i32 = arith.constant 0 : i32
    %c0_i32_0 = arith.constant 0 : i32
    %c0_i32_1 = arith.constant 0 : i32
    %c0_i32_2 = arith.constant 0 : i32
    return %c0_i32, %c0_i32_0, %c0_i32_1 : i32, i32, i32
  }
  func.func @transform_16(%arg0: i32) -> (i32, i32, i32) {
    %c0_i32 = arith.constant 0 : i32
    %c0_i32_0 = arith.constant 0 : i32
    %c0_i32_1 = arith.constant 0 : i32
    %c0_i32_2 = arith.constant 0 : i32
    return %c0_i32, %c0_i32_0, %c0_i32_1 : i32, i32, i32
  }
  func.func @transform_17(%arg0: i32) -> i32 {
    %c0_i32 = arith.constant 0 : i32
    %c0_i32_0 = arith.constant 0 : i32
    return %c0_i32 : i32
  }
  func.func @transform_18(%arg0: i32) -> i32 {
    %c0_i32 = arith.constant 0 : i32
    %c0_i32_0 = arith.constant 0 : i32
    return %c0_i32 : i32
  }
  func.func @transform_19(%arg0: i32) -> i32 {
    %c0_i32 = arith.constant 0 : i32
    %c0_i32_0 = arith.constant 0 : i32
    return %c0_i32 : i32
  }
  func.func @transform_20(%arg0: i32) -> i32 {
    %c0_i32 = arith.constant 0 : i32
    %c0_i32_0 = arith.constant 0 : i32
    return %c0_i32 : i32
  }
  func.func @transform_21(%arg0: i32) -> (i32, i32) {
    %c0_i32 = arith.constant 0 : i32
    %c0_i32_0 = arith.constant 0 : i32
    %c0_i32_1 = arith.constant 0 : i32
    return %c0_i32, %c0_i32_0 : i32, i32
  }
}

</mosaic_0001>

<bundles_post_ra>
// kernel: gcnn_desc_pool_forward.1
= control target key start
LH: loop header
LB: loop body
LE: loop exit
PB: predicated region body
PF: predicated region fallthrough
CT: control target
= control target key end

     0   :  { %s4029_s0 = inlined_call_operand.vmem [shape: f32[2,128,128], index: 0, kind: input, shape index: {}]   ;;  %s4030_s1 = inlined_call_operand.vmem [shape: f32[2,1,128], index: 1, kind: input, shape index: {}]   ;;  %s4031_s2 = inlined_call_operand.hbm [shape: f32[2,128,128], index: 2, kind: input, shape index: {}]   ;;  %s4032_s3 = inlined_call_operand.vmem [shape: f32[6,1,128], index: 3, kind: input, shape index: {}]   ;;  %s4033_s4 = inlined_call_operand.vmem [shape: f32[4,80,128], index: 4, kind: input, shape index: {}]   ;;  %s4034_s5 = inlined_call_operand.vmem [shape: f32[768,1], index: 5, kind: input, shape index: {}]   ;;  %s4035_s6 = inlined_call_operand.<no memory space> [shape: f32[1,1], index: 6, kind: input, shape index: {}]   ;;  %s4036_s7 = inlined_call_operand.vmem [shape: f32[16,16], index: 7, kind: input, shape index: {}]   ;;  %s4037_s8 = inlined_call_operand.vmem [shape: f32[16,128], index: 8, kind: input, shape index: {}]   ;;  %s4038_s9 = inlined_call_operand.vmem [shape: f32[2,16], index: 9, kind: input, shape index: {}]   ;;  %s4039_s10 = inlined_call_operand.vmem [shape: f32[16,16], index: 10, kind: input, shape index: {}]   ;;  %s4040_s11 = inlined_call_operand.vmem [shape: f32[16,128], index: 11, kind: input, shape index: {}]   ;;  %s4041_s12 = inlined_call_operand.vmem [shape: f32[2,16], index: 12, kind: input, shape index: {}]   ;;  %s4042_s13 = inlined_call_operand.vmem [shape: f32[2,8,80], index: 13, kind: input, shape index: {}]   ;;  %s4043_s14 = inlined_call_operand.vmem [shape: f32[2,8,80], index: 14, kind: input, shape index: {}]   ;;  %s4044_s15 = inlined_call_operand.vmem [shape: f32[2,8,80], index: 15, kind: input, shape index: {}]   ;;  %s4045_s16 = inlined_call_operand.vmem [shape: f32[2,8,80], index: 16, kind: input, shape index: {}]   ;;  %s4046_s17 = inlined_call_operand.vmem [shape: s32[2], index: 17, kind: input, shape index: {}]   ;;  %s4047_s18 = inlined_call_operand.vmem [shape: s32[2], index: 18, kind: input, shape index: {}]   ;;  %s4048_s19 = inlined_call_operand.vmem [shape: s32[2], index: 19, kind: input, shape index: {}]   ;;  %s4049_s20 = inlined_call_operand.vmem [shape: s32[2], index: 20, kind: input, shape index: {}]   ;;  %s4050_s21 = inlined_call_operand.vmem [shape: f32[2,1], index: 21, kind: output, shape index: {}]  }
   0x1   :  { %4057 = sst [smem:[#allocation16_spill]] %s4029_s0  ;;  %v26_v0 = vstv %s4035_s6 }
   0x2   :  { %4058 = sst [smem:[#allocation17_spill]] %s4030_s1  ;;  %27 = vst [vmem:[#allocation2] sm:$0x1] %v26_v0 }
   0x3   :  { %4059 = sst [smem:[#allocation18_spill]] %s4031_s2 }
   0x4   :  { %4060 = sst [smem:[#allocation19_spill]] %s4032_s3 }
   0x5   :  { %4061 = sst [smem:[#allocation20_spill]] %s4033_s4 }
   0x6   :  { %4062 = sst [smem:[#allocation21_spill]] %s4034_s5 }
   0x7   :  { %28 = vsyncpa [#allocation4], 0 }
   0x8   :  { %29 = vsyncpa [#allocation5], 0 }
   0x9   :  { %30 = vsyncpa [#allocation8], 0  ;;  %s92_s3 = sshll.u32 %s4047_s18, 4  ;;  %s93_s3 = int_to_ptr.vmem [resolvable:$true] %s92_s3 }
   0xa   :  { %31 = vsyncpa [#allocation11], 0  ;;  %s3090_s28 = scalar_lea.vmem %s93_s3, 16  ;;  %p3095_p1 = scmp.lt.s32.totalorder %s93_s3, %s93_s3 }
   0xb   :  { %p3091_p0 = scmp.ne.s32.totalorder %s93_s3, %s3090_s28  ;;  %p3096_p2 = scmp.lt.s32.totalorder %s3090_s28, %s3090_s28 }
   0xd   :  { %p3097_p3 = por %p3096_p2, %p3095_p1 }
   0xf   :  { %p3098_p4 = pnand %p3097_p3, %p3091_p0 }
  0x11   :  { %3101 = shalt.err (!%p3098_p4)
}
  0x12   :  { %s3168_s29 = smov [#allocation7]   ;;  %s3169_s6 = smov [#allocation3]  }
  0x13   :  { %95 = dma.vmem_to_smem %s93_s3, 16, %s3168_s29, [#allocation8]  }
  0x14   :  { %s41_s0 = sshll.u32 %s3169_s6, 4  ;;  %s4063_s5 = sld [smem:[#allocation18_spill]]  ;;  %s42_s0 = int_to_ptr.vmem [resolvable:$true] %s41_s0 }
  0x1a   :  { %s3102_s22 = scalar_lea.hbm %s4063_s5, 4096 }
  0x1b   :  { %p3103_p5 = scmp.ne.s32.totalorder %s4063_s5, %s3102_s22  ;;  %p3106_p6 = scmp.lt.u32.totalorder %s3102_s22, %s4063_s5 }
  0x1d   :  { %p3108_p7 = pnand %p3106_p6, %p3103_p5 }
  0x1f   :  { %3111 = shalt.err (!%p3108_p7)
}
  0x20   :  { %s3112_s2 = scalar_lea.vmem %s42_s0, 4096  ;;  %p3117_p9 = scmp.lt.s32.totalorder %s42_s0, %s42_s0 }
  0x21   :  { %p3113_p8 = scmp.ne.s32.totalorder %s42_s0, %s3112_s2  ;;  %p3118_p10 = scmp.lt.s32.totalorder %s3112_s2, %s3112_s2 }
  0x23   :  { %p3119_p11 = por %p3118_p10, %p3117_p9 }
  0x25   :  { %p3120_p12 = pnand %p3119_p11, %p3113_p8 }
  0x27   :  { %3123 = shalt.err (!%p3120_p12)
}
  0x28   :  { %s3170_s25 = smov 128   ;;  %s3171_s26 = smov 8  }
  0x29   :  { %47 = dma.hbm_to_vmem [thread:$0]  %s4063_s5, 4096, %s42_s0, [#allocation4], %s3170_s25, %s3170_s25, %s3171_s26  }
  0x2a   :  { %s82_s6 = sshll.u32 %s4046_s17, 4  ;;  %s102_s22 = sshll.u32 %s4048_s19, 4  ;;  %s83_s6 = int_to_ptr.vmem [resolvable:$true] %s82_s6  ;;  %s103_s22 = int_to_ptr.vmem [resolvable:$true] %s102_s22 }
  0x2b   :  { %s3124_s23 = scalar_lea.vmem %s83_s6, 16  ;;  %p3129_p0 = scmp.lt.s32.totalorder %s83_s6, %s83_s6 }
  0x2c   :  { %p3125_p13 = scmp.ne.s32.totalorder %s83_s6, %s3124_s23  ;;  %p3130_p1 = scmp.lt.s32.totalorder %s3124_s23, %s3124_s23 }
  0x2e   :  { %p3131_p2 = por %p3130_p1, %p3129_p0 }
  0x30   :  { %p3132_p3 = pnand %p3131_p2, %p3125_p13 }
  0x32   :  { %3135 = shalt.err (!%p3132_p3)
}
  0x33   :  { %s3172_s18 = smov [#allocation6]   ;;  %s3136_s0 = scalar_lea.vmem %s103_s22, 16 }
  0x34   :  { %85 = dma.vmem_to_smem %s83_s6, 16, %s3172_s18, [#allocation5]  }
  0x35   :  { %p3137_p4 = scmp.ne.s32.totalorder %s103_s22, %s3136_s0  ;;  %p3141_p5 = scmp.lt.s32.totalorder %s103_s22, %s103_s22 }
  0x36   :  { %p3142_p6 = scmp.lt.s32.totalorder %s3136_s0, %s3136_s0 }
  0x38   :  { %p3143_p7 = por %p3142_p6, %p3141_p5 }
  0x3a   :  { %p3144_p8 = pnand %p3143_p7, %p3137_p4 }
  0x3c   :  { %3147 = shalt.err (!%p3144_p8)
}
  0x3d   :  { %s3173_s17 = smov [#allocation9]   ;;  %s112_s1 = sshll.u32 %s4049_s20, 4  ;;  %s113_s1 = int_to_ptr.vmem [resolvable:$true] %s112_s1 }
  0x3e   :  { %105 = dma.vmem_to_smem %s103_s22, 16, %s3173_s17, [#allocation8]  }
  0x3f   :  { %s3148_s24 = scalar_lea.vmem %s113_s1, 16  ;;  %p3153_p10 = scmp.lt.s32.totalorder %s113_s1, %s113_s1 }
  0x40   :  { %p3149_p9 = scmp.ne.s32.totalorder %s113_s1, %s3148_s24  ;;  %p3154_p11 = scmp.lt.s32.totalorder %s3148_s24, %s3148_s24 }
  0x42   :  { %p3155_p12 = por %p3154_p11, %p3153_p10 }
  0x44   :  { %p3156_p13 = pnand %p3155_p12, %p3149_p9 }
  0x46   :  { %3159 = shalt.err (!%p3156_p13)
}
  0x47   :  { %s3174_s2 = smov [#allocation10]  }
  0x48   :  { %115 = dma.vmem_to_smem %s113_s1, 16, %s3174_s2, [#allocation11]  }
  0x49   :  { %3160 = dma.done.wait [#allocation4], 4096  }
  0x4a   :  { %3161 = vsyncadd [#allocation4], 4294963200 }
  0x4b   :  { %3162 = dma.done.wait [#allocation5], 16  }
  0x4c   :  { %3163 = vsyncadd [#allocation5], 4294967280 }
  0x4d   :  { %3164 = dma.done.wait [#allocation8], 32  }
  0x4e   :  { %3165 = vsyncadd [#allocation8], 4294967264 }
  0x4f   :  { %3166 = dma.done.wait [#allocation11], 16  }
  0x50   :  { %3167 = vsyncadd [#allocation11], 4294967280 }
  0x51   :  { %131 = sfence }
  0x52   :  { %s4064_s26 = sld [smem:[#allocation16_spill]]  ;;  %v139_v10 = vld [vmem:[%s4037_s8] sm:$0xff]  ;;  %v140_v26 = vld [vmem:[%s4037_s8 + $0x8] sm:$0xff]  ;;  %vm241_vm0 = vcmask 130048   ;;  %v3175_v32 = vmov 0.0|0.0   ;;  %vm3176_vm1 = vmmov 0  }
  0x53   :  { %2282 = vmatprep.mubr.f32.mxu1 %v139_v10  ;;  %v232_v27 = vld [vmem:[%s4036_s7] sm:$0xff]  ;;  %v233_v31 = vld [vmem:[%s4036_s7 + $0x8] sm:$0xff]  ;;  %v3177_v33 = vmov 0.0   ;;  %v405_v36 = vld [vmem:[#allocation3 + $0x10] sm:$0xff]  ;;  %s4065_s27 = sld [smem:[#allocation17_spill]]  ;;  %s4066_s4 = sld [smem:[#allocation21_spill]] }
  0x54   :  { %2289 = vmatprep.mubr.msk.f32.mxu0 %vm241_vm0, %v232_v27  ;;  %v403_v34 = vld [vmem:[#allocation3] sm:$0xff]  ;;  %v404_v35 = vld [vmem:[#allocation3 + $0x8] sm:$0xff]  ;;  %v406_v38 = vld [vmem:[#allocation3 + $0x18] sm:$0xff]  ;;  %s4067_s3 = sld [smem:[#allocation19_spill]]  ;;  %s4068_s7 = sld [smem:[#allocation20_spill]]  ;;  %vm1050_vm7 = vcmask 654336  }
  0x55   :  { %v2760_v37 = vpack.c.bf16 %v404_v35, %v403_v34  ;;  %v2763_v39 = vpack.c.bf16 %v406_v38, %v405_v36  ;;  %v407_v40 = vld [vmem:[#allocation3 + $0x20] sm:$0xff]  ;;  %v408_v41 = vld [vmem:[#allocation3 + $0x28] sm:$0xff]  ;;  %v409_v43 = vld [vmem:[#allocation3 + $0x30] sm:$0xff]  ;;  %s1132_s6 = sld [smem:[#allocation6]]  ;;  %vm1187_vm12 = vcmask 1041409   ;;  %s1998_s17 = sld [smem:[#allocation9 + $0x1]] }
  0x56   :  { %v2766_v42 = vpack.c.bf16 %v408_v41, %v407_v40  ;;  %v410_v44 = vld [vmem:[#allocation3 + $0x38] sm:$0xff]  ;;  %v411_v46 = vld [vmem:[#allocation3 + $0x40] sm:$0xff]  ;;  %v412_v47 = vld [vmem:[#allocation3 + $0x48] sm:$0xff]  ;;  %s1355_s23 = sld [smem:[#allocation7]] }
  0x57   :  { %v2769_v45 = vpack.c.bf16 %v410_v44, %v409_v43  ;;  %v2772_v48 = vpack.c.bf16 %v412_v47, %v411_v46  ;;  %v413_v49 = vld [vmem:[#allocation3 + $0x50] sm:$0xff]  ;;  %v414_v50 = vld [vmem:[#allocation3 + $0x58] sm:$0xff]  ;;  %v415_v52 = vld [vmem:[#allocation3 + $0x60] sm:$0xff] }
  0x58   :  { %v141_v1 = vld [vmem:[%s4064_s26] sm:$0xff]  ;;  %v142_v2 = vld [vmem:[%s4064_s26 + $0x8] sm:$0xff]  ;;  %v143_v3 = vld [vmem:[%s4064_s26 + $0x10] sm:$0xff]  ;;  %v2775_v51 = vpack.c.bf16 %v414_v50, %v413_v49 }
  0x59   :  { %v2720_v4 = vpack.c.bf16 %v142_v2, %v141_v1  ;;  %v144_v5 = vld [vmem:[%s4064_s26 + $0x18] sm:$0xff]  ;;  %v145_v7 = vld [vmem:[%s4064_s26 + $0x20] sm:$0xff]  ;;  %v146_v8 = vld [vmem:[%s4064_s26 + $0x28] sm:$0xff] }
  0x5a   :  { %v2724_v6 = vpack.c.bf16 %v144_v5, %v143_v3  ;;  %v2728_v9 = vpack.c.bf16 %v146_v8, %v145_v7  ;;  %v147_v11 = vld [vmem:[%s4064_s26 + $0x30] sm:$0xff]  ;;  %v148_v12 = vld [vmem:[%s4064_s26 + $0x38] sm:$0xff]  ;;  %v149_v14 = vld [vmem:[%s4064_s26 + $0x40] sm:$0xff] }
  0x5b   :  { %2721 = vmatprep.subr.bf16.mxu1 %v2720_v4  ;;  %v2732_v13 = vpack.c.bf16 %v148_v12, %v147_v11  ;;  %v150_v15 = vld [vmem:[%s4064_s26 + $0x48] sm:$0xff]  ;;  %v151_v17 = vld [vmem:[%s4064_s26 + $0x50] sm:$0xff]  ;;  %v152_v18 = vld [vmem:[%s4064_s26 + $0x58] sm:$0xff] }
  0x5c   :  { %2723 = vmatpush3.bf16.msra.mxu1 %v2720_v4  ;;  %v2736_v16 = vpack.c.bf16 %v150_v15, %v149_v14  ;;  %v2740_v19 = vpack.c.bf16 %v152_v18, %v151_v17  ;;  %v153_v20 = vld [vmem:[%s4064_s26 + $0x60] sm:$0xff]  ;;  %v154_v21 = vld [vmem:[%s4064_s26 + $0x68] sm:$0xff]  ;;  %v155_v23 = vld [vmem:[%s4064_s26 + $0x70] sm:$0xff] }
  0x5d   :  { %2725 = vmatprep.subr.bf16.mxu1 %v2724_v6  ;;  %v2744_v22 = vpack.c.bf16 %v154_v21, %v153_v20  ;;  %v156_v24 = vld [vmem:[%s4064_s26 + $0x78] sm:$0xff]  ;;  %v416_v53 = vld [vmem:[#allocation3 + $0x68] sm:$0xff]  ;;  %v1938_v58 = vld [vmem:[%s4065_s27] ss:$0 sm:$0xff] }
  0x5e   :  { %v2748_v25 = vpack.c.bf16 %v156_v24, %v155_v23  ;;  %v2778_v54 = vpack.c.bf16 %v416_v53, %v415_v52  ;;  %v417_v55 = vld [vmem:[#allocation3 + $0x70] sm:$0xff]  ;;  %v418_v56 = vld [vmem:[#allocation3 + $0x78] sm:$0xff]  ;;  %v504_v14 = vld [vmem:[%s4066_s4 + $0x28] sm:$0xff] }
  0x5f   :  { %v2781_v57 = vpack.c.bf16 %v418_v56, %v417_v55  ;;  %v329_v4 = vld [vmem:[%s4038_s9] sm:$0x3]  ;;  %v501_v8 = vld [vmem:[%s4066_s4 + $0x10] sm:$0xff]  ;;  %v506_v17 = vld [vmem:[%s4066_s4 + $0x38] sm:$0xff]  ;;  %s1577_s9 = sld [smem:[#allocation9]] }
  0x60   :  { %2727 = vmatpush3.bf16.msra.mxu1 %v2724_v6  ;;  %v499_v5 = vld [vmem:[%s4066_s4] sm:$0xff]  ;;  %v500_v6 = vld [vmem:[%s4066_s4 + $0x8] sm:$0xff]  ;;  %v510_v23 = vld [vmem:[%s4066_s4 + $0x58] sm:$0xff] }
  0x61   :  { %2729 = vmatprep.subr.bf16.mxu1 %v2728_v9  ;;  %v2784_v7 = vpack.c.bf16 %v500_v6, %v499_v5  ;;  %v508_v20 = vld [vmem:[%s4066_s4 + $0x48] sm:$0xff]  ;;  %v1942_v36 = vld [vmem:[%s4067_s3] ss:$0 sm:$0xff]  ;;  %v1945_v40 = vld [vmem:[%s4064_s26 + $0x90] sm:$0xff] }
  0x62   :  { %v1944_v34 = vld [vmem:[%s4064_s26 + $0x88] sm:$0xff]  ;;  %v1946_v41 = vld [vmem:[%s4064_s26 + $0x98] sm:$0xff]  ;;  %v586_v44 = vld [vmem:[%s4040_s11] sm:$0xff] }
  0x63   :  { %v2811_v43 = vpack.c.bf16 %v1946_v41, %v1945_v40  ;;  %v1947_v46 = vld [vmem:[%s4064_s26 + $0xa0] sm:$0xff]  ;;  %v1948_v47 = vld [vmem:[%s4064_s26 + $0xa8] sm:$0xff]  ;;  %v1949_v49 = vld [vmem:[%s4064_s26 + $0xb0] sm:$0xff] }
  0x64   :  { %2731 = vmatpush3.bf16.msra.mxu1 %v2728_v9  ;;  %v502_v9 = vld [vmem:[%s4066_s4 + $0x18] sm:$0xff]  ;;  %v1951_v52 = vld [vmem:[%s4064_s26 + $0xc0] sm:$0xff]  ;;  %v1952_v53 = vld [vmem:[%s4064_s26 + $0xc8] sm:$0xff] }
  0x65   :  { %2733 = vmatprep.subr.bf16.mxu1 %v2732_v13  ;;  %v2787_v12 = vpack.c.bf16 %v502_v9, %v501_v8  ;;  %v1950_v50 = vld [vmem:[%s4064_s26 + $0xb8] sm:$0xff]  ;;  %v1953_v55 = vld [vmem:[%s4064_s26 + $0xd0] sm:$0xff]  ;;  %v1040_v8 = vld [vmem:[%s4068_s7] sm:$0xff] }
  0x66   :  { %v1954_v56 = vld [vmem:[%s4064_s26 + $0xd8] sm:$0xff]  ;;  %v1041_v9 = vld [vmem:[%s4068_s7 + $0x8] sm:$0xff] }
  0x67   :  { %v859_v40 = vld [vmem:[#allocation3 + $0xb8] sm:$0xff] }
  0x68   :  { %2735 = vmatpush3.bf16.msra.mxu1 %v2732_v13  ;;  %v503_v13 = vld [vmem:[%s4066_s4 + $0x20] sm:$0xff] }
  0x69   :  { %2737 = vmatprep.subr.bf16.mxu1 %v2736_v16  ;;  %v2790_v15 = vpack.c.bf16 %v504_v14, %v503_v13  ;;  %v1044_v14 = vld [vmem:[%s4068_s7 + $0x20] sm:$0xff] }
  0x6c   :  { %2739 = vmatpush3.bf16.msra.mxu1 %v2736_v16  ;;  %v505_v16 = vld [vmem:[%s4066_s4 + $0x30] sm:$0xff] }
  0x6d   :  { %2741 = vmatprep.subr.bf16.mxu1 %v2740_v19  ;;  %v2793_v18 = vpack.c.bf16 %v506_v17, %v505_v16  ;;  %v1960_v17 = vld [vmem:[%s4065_s27 + $0x1] ss:$0 sm:$0xff]  ;;  %s1799_s27 = sld [smem:[#allocation10]] }
  0x70   :  { %2743 = vmatpush3.bf16.msra.mxu1 %v2740_v19  ;;  %v507_v19 = vld [vmem:[%s4066_s4 + $0x40] sm:$0xff] }
  0x71   :  { %2745 = vmatprep.subr.bf16.mxu1 %v2744_v22  ;;  %v2796_v21 = vpack.c.bf16 %v508_v20, %v507_v19 }
  0x74   :  { %2747 = vmatpush3.bf16.msra.mxu1 %v2744_v22  ;;  %v509_v22 = vld [vmem:[%s4066_s4 + $0x50] sm:$0xff] }
  0x75   :  { %2749 = vmatprep.subr.bf16.mxu1 %v2748_v25  ;;  %v2799_v24 = vpack.c.bf16 %v510_v23, %v509_v22 }
  0x78   :  { %2751 = vmatpush3.bf16.msra.mxu1 %v2748_v25  ;;  %v511_v25 = vld [vmem:[%s4066_s4 + $0x60] sm:$0xff] }
  0x79   :  { %2759 = vmatprep.subr.bf16.mxu1 %v3175_v32 }
  0x7b   :  { %2283 = vmatmul.mubr.f32.vlgmr.msra.gmra.mrb[0].mxu1 %v140_v26  ;;  %v512_v26 = vld [vmem:[%s4066_s4 + $0x68] sm:$0xff] }
  0x7c   :  { %2331 = vmatprep.mubr.msk.f32.mxu1 %vm3176_vm1, %v3177_v33  ;;  %2761 = vmatpush3.bf16.msra.mxu1 %v2760_v37  ;;  %v2802_v27 = vpack.c.bf16 %v512_v26, %v511_v25  ;;  %v852_v26 = vld [vmem:[#allocation3 + $0x80] sm:$0xff] }
  0x7d   :  { %2762 = vmatprep.subr.bf16.mxu1 %v3175_v32 }
  0x80   :  { %2764 = vmatpush3.bf16.msra.mxu1 %v2763_v39 }
  0x81   :  { %2765 = vmatprep.subr.bf16.mxu1 %v3175_v32 }
  0x84   :  { %2767 = vmatpush3.bf16.msra.mxu1 %v2766_v42 }
  0x85   :  { %2768 = vmatprep.subr.bf16.mxu1 %v3175_v32 }
  0x88   :  { %2770 = vmatpush3.bf16.msra.mxu1 %v2769_v45 }
  0x89   :  { %2771 = vmatprep.subr.bf16.mxu1 %v3175_v32 }
  0x8c   :  { %2773 = vmatpush3.bf16.msra.mxu1 %v2772_v48  ;;  %v2815_v48 = vpack.c.bf16 %v1948_v47, %v1947_v46  ;;  %v863_v46 = vld [vmem:[#allocation3 + $0xd8] sm:$0xff] }
  0x8d   :  { %2774 = vmatprep.subr.bf16.mxu1 %v3175_v32 }
  0x90   :  { %2776 = vmatpush3.bf16.msra.mxu1 %v2775_v51  ;;  %v2819_v51 = vpack.c.bf16 %v1950_v50, %v1949_v49  ;;  %v865_v49 = vld [vmem:[#allocation3 + $0xe8] sm:$0xff] }
  0x91   :  { %2777 = vmatprep.subr.bf16.mxu1 %v3175_v32 }
  0x94   :  { %2779 = vmatpush3.bf16.msra.mxu1 %v2778_v54  ;;  %v2823_v54 = vpack.c.bf16 %v1952_v53, %v1951_v52  ;;  %v867_v52 = vld [vmem:[#allocation3 + $0xf8] sm:$0xff] }
  0x95   :  { %2780 = vmatprep.subr.bf16.mxu1 %v3175_v32 }
  0x98   :  { %2782 = vmatpush3.bf16.msra.mxu1 %v2781_v57  ;;  %v2827_v57 = vpack.c.bf16 %v1954_v56, %v1953_v55  ;;  %v1047_v55 = vld [vmem:[%s4068_s7 + $0x38] sm:$0xff] }
  0x99   :  { %2783 = vmatprep.subr.bf16.mxu1 %v3175_v32 }
 0x14e   :  { %v2284_v28 = vpop.f32.mrb[0].mxu1 }
 0x14f   :  { %v223_v29 = vpop.f32.mrb[1].mxu1 }
 0x150   :  { %v2752_v30 = vpack.c.bf16 %v2284_v28, %v223_v29  ;;  %v513_v28 = vld [vmem:[%s4066_s4 + $0x70] sm:$0xff]  ;;  %v514_v29 = vld [vmem:[%s4066_s4 + $0x78] sm:$0xff] }
 0x152   :  { %2753 = vmatprep.subr.bf16.mxu0 %v2752_v30 }
 0x153   :  { %2755 = vmatpush3.bf16.msra.mxu0 %v2752_v30  ;;  %v2805_v30 = vpack.c.bf16 %v514_v29, %v513_v28  ;;  %v777_v29 = vld [vmem:[%s4041_s12] sm:$0x3]  ;;  %s2013_s12 = sld [smem:[#allocation10 + $0x1]] }
 0x154   :  { %2756 = vmatprep.subr.bf16.mxu0 %v3175_v32 }
 0x156   :  { %2290 = vmatmul.mubr.msk.f32.vlgmr.msra.gmra.mrb[0].mxu0 %vm241_vm0, %v233_v31  ;;  %v1943_v31 = vld [vmem:[%s4064_s26 + $0x80] sm:$0xff] }
 0x157   :  { %2296 = vmatprep.mubr.msk.f32.mxu0 %vm3176_vm1, %v3177_v33  ;;  %v2807_v35 = vpack.c.bf16 %v1944_v34, %v1943_v31  ;;  %v854_v31 = vld [vmem:[#allocation3 + $0x90] sm:$0xff]  ;;  %v855_v34 = vld [vmem:[#allocation3 + $0x98] sm:$0xff] }
 0x229   :  { %v2291_v59 = vpop.f32.mrb[0].mxu0 }
 0x22a   :  { %v320_v60 = vadd.f32 %v2291_v59, %v1938_v58  ;;  %v314_v61 = vpop.f32.mrb[1].mxu0  ;;  %v1956_v59 = vld [vmem:[%s4064_s26 + $0xe8] sm:$0xff] }
 0x22b   :  { %v315_v62 = vadd.f32 %v1938_v58, %v314_v61  ;;  %v1955_v58 = vld [vmem:[%s4064_s26 + $0xe0] sm:$0xff]  ;;  %v1957_v61 = vld [vmem:[%s4064_s26 + $0xf0] sm:$0xff] }
 0x22c   :  { %vm324_vm2 = vcmp.ge.f32.partialorder %v320_v60, 0.0  ;;  %v326_v63 = vmul.f32 0.01, %v320_v60 }
 0x22d   :  { %vm323_vm3 = vcmp.ge.f32.partialorder %v315_v62, 0.0  ;;  %v325_v0 = vmul.f32 0.01, %v315_v62 }
 0x22e   :  { %v328_v1 = vsel %vm324_vm2, %v320_v60, %v326_v63  ;;  %v2831_v60 = vpack.c.bf16 %v1956_v59, %v1955_v58  ;;  %v1049_v58 = vld [vmem:[%s4068_s7 + $0x48] sm:$0xff] }
 0x22f   :  { %v327_v2 = vsel %vm323_vm3, %v315_v62, %v325_v0  ;;  %v1958_v62 = vld [vmem:[%s4064_s26 + $0xf8] sm:$0xff]  ;;  %v587_v0 = vld [vmem:[%s4040_s11 + $0x8] sm:$0xff] }
 0x230   :  { %v2757_v3 = vpack.c.bf16 %v328_v1, %v327_v2  ;;  %v2835_v63 = vpack.c.bf16 %v1958_v62, %v1957_v61  ;;  %v680_v1 = vld [vmem:[%s4039_s10] sm:$0xff]  ;;  %v1971_v61 = vld [vmem:[%s4068_s7 + $0x50] sm:$0xff]  ;;  %v1972_v62 = vld [vmem:[%s4068_s7 + $0x58] sm:$0xff] }
 0x232   :  { %2758 = vmatpush3.bf16.msra.mxu0 %v2757_v3 }
 0x235   :  { %2297 = vmatmul.mubr.msk.f32.vlgmr.msra.gmra.mrb[2].mxu0 %vm241_vm0, %v329_v4 }
 0x236   :  { %2408 = vmatprep.mubr.msk.f32.mxu0 %vm241_vm0, %v680_v1  ;;  %v2938_v1 = vpack.c.bf16 %v1972_v62, %v1971_v61  ;;  %v954_v61 = vld [vmem:[%s4066_s4 + $0xa8] sm:$0xff] }
 0x308   :  { %v399_v10 = vpop.f32.mrb[2].mxu0 }
 0x309   :  { %v2298_v11 = vpop.f32.mrb[3].mxu0  ;;  %2332 = vmatmul.mubr.f32.vlgmr.msra.gmra.mrb[2].mxu1 %v399_v10  ;;  %v2894_v10 = vpack.c.bf16 %v1041_v9, %v1040_v8  ;;  %v1977_v9 = vld [vmem:[%s4068_s7 + $0x80] sm:$0xff] }
 0x30a   :  { %2785 = vmatpush3.bf16.msra.mxu1 %v2784_v7  ;;  %2366 = vmatprep.mubr.msk.f32.mxu1 %vm3176_vm1, %v3177_v33  ;;  %v681_v7 = vld [vmem:[%s4039_s10 + $0x8] sm:$0xff]  ;;  %v1042_v11 = vld [vmem:[%s4068_s7 + $0x10] sm:$0xff] }
 0x30b   :  { %2786 = vmatprep.subr.bf16.mxu1 %v3175_v32 }
 0x30e   :  { %2788 = vmatpush3.bf16.msra.mxu1 %v2787_v12  ;;  %v1043_v12 = vld [vmem:[%s4068_s7 + $0x18] sm:$0xff] }
 0x30f   :  { %2789 = vmatprep.subr.bf16.mxu1 %v3175_v32  ;;  %v2898_v13 = vpack.c.bf16 %v1043_v12, %v1042_v11  ;;  %v1979_v12 = vld [vmem:[%s4068_s7 + $0x90] sm:$0xff] }
 0x312   :  { %2791 = vmatpush3.bf16.msra.mxu1 %v2790_v15  ;;  %v1045_v15 = vld [vmem:[%s4068_s7 + $0x28] sm:$0xff] }
 0x313   :  { %2792 = vmatprep.subr.bf16.mxu1 %v3175_v32  ;;  %v2902_v16 = vpack.c.bf16 %v1045_v15, %v1044_v14  ;;  %v1986_v15 = vld [vmem:[%s4068_s7 + $0xa0] sm:$0xff] }
 0x316   :  { %2794 = vmatpush3.bf16.msra.mxu1 %v2793_v18 }
 0x317   :  { %2795 = vmatprep.subr.bf16.mxu1 %v3175_v32 }
 0x31a   :  { %2797 = vmatpush3.bf16.msra.mxu1 %v2796_v21 }
 0x31b   :  { %2798 = vmatprep.subr.bf16.mxu1 %v3175_v32 }
 0x31e   :  { %2800 = vmatpush3.bf16.msra.mxu1 %v2799_v24 }
 0x31f   :  { %2801 = vmatprep.subr.bf16.mxu1 %v3175_v32 }
 0x322   :  { %2803 = vmatpush3.bf16.msra.mxu1 %v2802_v27  ;;  %v853_v27 = vld [vmem:[#allocation3 + $0x88] sm:$0xff] }
 0x323   :  { %2804 = vmatprep.subr.bf16.mxu1 %v3175_v32 }
 0x326   :  { %2806 = vmatpush3.bf16.msra.mxu1 %v2805_v30  ;;  %v2847_v30 = vpack.c.bf16 %v853_v27, %v852_v26  ;;  %v1992_v26 = vld [vmem:[%s4068_s7 + $0xd0] sm:$0xff]  ;;  %v1993_v27 = vld [vmem:[%s4068_s7 + $0xd8] sm:$0xff] }
 0x327   :  { %2808 = vmatprep.subr.bf16.mxu1 %v2807_v35 }
 0x3dc   :  { %v492_v37 = vpop.f32.mrb[2].mxu1 }
 0x3dd   :  { %v493_v38 = vadd.f32 %v1942_v36, %v492_v37  ;;  %v2333_v39 = vpop.f32.mrb[3].mxu1  ;;  %v856_v36 = vld [vmem:[#allocation3 + $0xa0] sm:$0xff]  ;;  %v857_v37 = vld [vmem:[#allocation3 + $0xa8] sm:$0xff] }
 0x3de   :  { %v858_v39 = vld [vmem:[#allocation3 + $0xb0] sm:$0xff] }
 0x3df   :  { %vm496_vm4 = vcmp.ge.f32.partialorder %v493_v38, 0.0  ;;  %v497_v42 = vmul.f32 0.01, %v493_v38  ;;  %v2856_v41 = vpack.c.bf16 %v859_v40, %v858_v39  ;;  %v1484_v39 = vld [vmem:[%s4044_s15 + $0x8] sm:$0xff] }
 0x3e1   :  { %v498_v45 = vsel %vm496_vm4, %v493_v38, %v497_v42  ;;  %v2853_v38 = vpack.c.bf16 %v857_v37, %v856_v36  ;;  %v860_v42 = vld [vmem:[#allocation3 + $0xc0] sm:$0xff] }
 0x3e2   :  { %2367 = vmatmul.mubr.f32.vlgmr.msra.gmra.mrb[4].mxu1 %v498_v45  ;;  %v862_v45 = vld [vmem:[#allocation3 + $0xd0] sm:$0xff]  ;;  %v2003_v37 = vld [vmem:[%s4068_s7 + $0x100] sm:$0xff] }
 0x3e3   :  { %2810 = vmatpush3.bf16.msra.mxu1 %v2807_v35  ;;  %2401 = vmatprep.mubr.f32.mxu1 %v586_v44  ;;  %v2850_v35 = vpack.c.bf16 %v855_v34, %v854_v31  ;;  %v2862_v47 = vpack.c.bf16 %v863_v46, %v862_v45  ;;  %v2001_v34 = vld [vmem:[%s4068_s7 + $0xf0] sm:$0xff]  ;;  %v2007_v45 = vld [vmem:[%s4068_s7 + $0x120] sm:$0xff]  ;;  %v2008_v46 = vld [vmem:[%s4068_s7 + $0x128] sm:$0xff] }
 0x3e4   :  { %2812 = vmatprep.subr.bf16.mxu1 %v2811_v43 }
 0x3e7   :  { %2814 = vmatpush3.bf16.msra.mxu1 %v2811_v43  ;;  %v861_v43 = vld [vmem:[#allocation3 + $0xc8] sm:$0xff] }
 0x3e8   :  { %2816 = vmatprep.subr.bf16.mxu1 %v2815_v48  ;;  %v2859_v44 = vpack.c.bf16 %v861_v43, %v860_v42  ;;  %v2005_v42 = vld [vmem:[%s4068_s7 + $0x110] sm:$0xff]  ;;  %v2006_v43 = vld [vmem:[%s4068_s7 + $0x118] sm:$0xff] }
 0x3eb   :  { %2818 = vmatpush3.bf16.msra.mxu1 %v2815_v48  ;;  %v864_v48 = vld [vmem:[#allocation3 + $0xe0] sm:$0xff] }
 0x3ec   :  { %2820 = vmatprep.subr.bf16.mxu1 %v2819_v51  ;;  %v2865_v50 = vpack.c.bf16 %v865_v49, %v864_v48  ;;  %v2009_v48 = vld [vmem:[%s4068_s7 + $0x130] sm:$0xff]  ;;  %v2010_v49 = vld [vmem:[%s4068_s7 + $0x138] sm:$0xff] }
 0x3ef   :  { %2822 = vmatpush3.bf16.msra.mxu1 %v2819_v51  ;;  %v866_v51 = vld [vmem:[#allocation3 + $0xf0] sm:$0xff] }
 0x3f0   :  { %2824 = vmatprep.subr.bf16.mxu1 %v2823_v54  ;;  %v2868_v53 = vpack.c.bf16 %v867_v52, %v866_v51  ;;  %v1706_v51 = vld [vmem:[%s4045_s16 + $0x8] sm:$0xff]  ;;  %v949_v52 = vld [vmem:[%s4066_s4 + $0x80] sm:$0xff] }
 0x3f3   :  { %2826 = vmatpush3.bf16.msra.mxu1 %v2823_v54  ;;  %v1046_v54 = vld [vmem:[%s4068_s7 + $0x30] sm:$0xff] }
 0x3f4   :  { %2828 = vmatprep.subr.bf16.mxu1 %v2827_v57  ;;  %v2906_v56 = vpack.c.bf16 %v1047_v55, %v1046_v54  ;;  %v951_v55 = vld [vmem:[%s4066_s4 + $0x90] sm:$0xff] }
 0x3f7   :  { %2830 = vmatpush3.bf16.msra.mxu1 %v2827_v57  ;;  %v1048_v57 = vld [vmem:[%s4068_s7 + $0x40] sm:$0xff] }
 0x3f8   :  { %2832 = vmatprep.subr.bf16.mxu1 %v2831_v60  ;;  %v2910_v59 = vpack.c.bf16 %v1049_v58, %v1048_v57 }
 0x3fb   :  { %2834 = vmatpush3.bf16.msra.mxu1 %v2831_v60  ;;  %v1038_v60 = vld [vmem:[%s4042_s13] sm:$0xff] }
 0x3fc   :  { %2836 = vmatprep.subr.bf16.mxu1 %v2835_v63 }
 0x3ff   :  { %2838 = vmatpush3.bf16.msra.mxu1 %v2835_v63  ;;  %v1973_v63 = vld [vmem:[%s4068_s7 + $0x60] sm:$0xff] }
 0x400   :  { %2895 = vmatprep.subr.bf16.mxu1 %v2894_v10 }
 0x402   :  { %2402 = vmatmul.mubr.f32.vlgmr.msra.gmra.mrb[6].mxu1 %v587_v0  ;;  %v1974_v0 = vld [vmem:[%s4068_s7 + $0x68] sm:$0xff] }
 0x403   :  { %2897 = vmatpush3.bf16.msra.mxu1 %v2894_v10  ;;  %2508 = vmatprep.mubr.msk.f32.mxu1 %vm1050_vm7, %v1038_v60  ;;  %v1978_v10 = vld [vmem:[%s4068_s7 + $0x88] sm:$0xff]  ;;  %v953_v60 = vld [vmem:[%s4066_s4 + $0xa0] sm:$0xff] }
 0x404   :  { %2899 = vmatprep.subr.bf16.mxu1 %v2898_v13  ;;  %v2950_v11 = vpack.c.bf16 %v1978_v10, %v1977_v9  ;;  %v2877_v62 = vpack.c.bf16 %v954_v61, %v953_v60  ;;  %v961_v9 = vld [vmem:[%s4066_s4 + $0xe0] sm:$0xff]  ;;  %v962_v10 = vld [vmem:[%s4066_s4 + $0xe8] sm:$0xff] }
 0x405   :  { %v1985_v61 = vld [vmem:[%s4067_s3 + $0x3] ss:$0 sm:$0xff] }
 0x407   :  { %2901 = vmatpush3.bf16.msra.mxu1 %v2898_v13  ;;  %v1980_v13 = vld [vmem:[%s4068_s7 + $0x98] sm:$0xff] }
 0x408   :  { %2903 = vmatprep.subr.bf16.mxu1 %v2902_v16  ;;  %v2954_v14 = vpack.c.bf16 %v1980_v13, %v1979_v12  ;;  %v963_v12 = vld [vmem:[%s4066_s4 + $0xf0] sm:$0xff]  ;;  %v964_v13 = vld [vmem:[%s4066_s4 + $0xf8] sm:$0xff] }
 0x40b   :  { %2905 = vmatpush3.bf16.msra.mxu1 %v2902_v16  ;;  %v1987_v16 = vld [vmem:[%s4068_s7 + $0xa8] sm:$0xff] }
 0x40c   :  { %2907 = vmatprep.subr.bf16.mxu1 %v2906_v56 }
 0x40f   :  { %2909 = vmatpush3.bf16.msra.mxu1 %v2906_v56  ;;  %v952_v56 = vld [vmem:[%s4066_s4 + $0x98] sm:$0xff] }
 0x410   :  { %2911 = vmatprep.subr.bf16.mxu1 %v2910_v59 }
 0x413   :  { %2913 = vmatpush3.bf16.msra.mxu1 %v2910_v59  ;;  %v2874_v59 = vpack.c.bf16 %v952_v56, %v951_v55 }
 0x414   :  { %2939 = vmatprep.subr.bf16.mxu1 %v2938_v1 }
 0x4b5   :  { %v3516_v2 = vpop.f32.mrb[4].mxu1 }
 0x4b6   :  { %v2368_v3 = vpop.f32.mrb[5].mxu1 }
 0x4b7   :  { %v1039_v3 = vld [vmem:[%s4042_s13 + $0x8] sm:$0xff] }
 0x4b8   :  { %2509 = vmatmul.mubr.msk.f32.vlgmr.msra.gmra.mrb[8].mxu1 %vm1050_vm7, %v1039_v3  ;;  %v957_v3 = vld [vmem:[%s4066_s4 + $0xc0] sm:$0xff] }
 0x4b9   :  { %2941 = vmatpush3.bf16.msra.mxu1 %v2938_v1 }
 0x4d5   :  { %v2403_v4 = vpop.f32.mrb[6].mxu1 }
 0x4d6   :  { %v671_v5 = vpop.f32.mrb[7].mxu1 }
 0x4d7   :  { %v2839_v6 = vpack.c.bf16 %v2403_v4, %v671_v5  ;;  %v2942_v4 = vpack.c.bf16 %v1974_v0, %v1973_v63  ;;  %v1261_v5 = vld [vmem:[%s4043_s14] sm:$0xff]  ;;  %v955_v63 = vld [vmem:[%s4066_s4 + $0xb0] sm:$0xff]  ;;  %v956_v0 = vld [vmem:[%s4066_s4 + $0xb8] sm:$0xff] }
 0x4d8   :  { %2566 = vmatprep.mubr.msk.f32.mxu1 %vm1050_vm7, %v1261_v5  ;;  %v2880_v1 = vpack.c.bf16 %v956_v0, %v955_v63 }
 0x4d9   :  { %2840 = vmatprep.subr.bf16.mxu0 %v2839_v6  ;;  %2943 = vmatprep.subr.bf16.mxu1 %v2942_v4 }
 0x4da   :  { %2842 = vmatpush3.bf16.msra.mxu0 %v2839_v6  ;;  %v1975_v6 = vld [vmem:[%s4068_s7 + $0x70] sm:$0xff]  ;;  %2945 = vmatpush3.bf16.msra.mxu1 %v2942_v4  ;;  %v958_v4 = vld [vmem:[%s4066_s4 + $0xc8] sm:$0xff] }
 0x4db   :  { %2843 = vmatprep.subr.bf16.mxu0 %v3175_v32  ;;  %v2883_v5 = vpack.c.bf16 %v958_v4, %v957_v3 }
 0x4dd   :  { %2409 = vmatmul.mubr.msk.f32.vlgmr.msra.gmra.mrb[4].mxu0 %vm241_vm0, %v681_v7  ;;  %v1976_v7 = vld [vmem:[%s4068_s7 + $0x78] sm:$0xff] }
 0x4de   :  { %2415 = vmatprep.mubr.msk.f32.mxu0 %vm3176_vm1, %v3177_v33  ;;  %v2946_v8 = vpack.c.bf16 %v1976_v7, %v1975_v6  ;;  %v959_v6 = vld [vmem:[%s4066_s4 + $0xd0] sm:$0xff]  ;;  %v960_v7 = vld [vmem:[%s4066_s4 + $0xd8] sm:$0xff] }
 0x4e0   :  { %2947 = vmatprep.subr.bf16.mxu1 %v2946_v8 }
 0x4e1   :  { %2949 = vmatpush3.bf16.msra.mxu1 %v2946_v8  ;;  %v2886_v8 = vpack.c.bf16 %v960_v7, %v959_v6 }
 0x4e2   :  { %2951 = vmatprep.subr.bf16.mxu1 %v2950_v11 }
 0x4e5   :  { %2953 = vmatpush3.bf16.msra.mxu1 %v2950_v11  ;;  %v2889_v11 = vpack.c.bf16 %v962_v10, %v961_v9  ;;  %v1580_v10 = vstv %s1998_s17 }
 0x4e6   :  { %2955 = vmatprep.subr.bf16.mxu1 %v2954_v14 }
 0x4e9   :  { %2957 = vmatpush3.bf16.msra.mxu1 %v2954_v14  ;;  %v2892_v14 = vpack.c.bf16 %v964_v13, %v963_v12 }
 0x5b0   :  { %v2410_v18 = vpop.f32.mrb[4].mxu0 }
 0x5b1   :  { %v768_v19 = vadd.f32 %v2410_v18, %v1960_v17  ;;  %v762_v20 = vpop.f32.mrb[5].mxu0  ;;  %v1988_v18 = vld [vmem:[%s4068_s7 + $0xb0] sm:$0xff] }
 0x5b2   :  { %v763_v21 = vadd.f32 %v1960_v17, %v762_v20  ;;  %v2982_v17 = vpack.c.bf16 %v1987_v16, %v1986_v15  ;;  %v1262_v20 = vld [vmem:[%s4043_s14 + $0x8] sm:$0xff]  ;;  %v1036_v15 = vlaneseq }
 0x5b3   :  { %vm772_vm5 = vcmp.ge.f32.partialorder %v768_v19, 0.0  ;;  %v774_v22 = vmul.f32 0.01, %v768_v19  ;;  %2567 = vmatmul.mubr.msk.f32.vlgmr.msra.gmra.mrb[10].mxu1 %vm1050_vm7, %v1262_v20 }
 0x5b4   :  { %vm771_vm6 = vcmp.ge.f32.partialorder %v763_v21, 0.0  ;;  %v773_v23 = vmul.f32 0.01, %v763_v21  ;;  %2983 = vmatprep.subr.bf16.mxu1 %v2982_v17  ;;  %v3753_v16 = vshrl.u32 %v1036_v15, 7 }
 0x5b5   :  { %v776_v24 = vsel %vm772_vm5, %v768_v19, %v774_v22  ;;  %v1989_v19 = vld [vmem:[%s4068_s7 + $0xb8] sm:$0xff]  ;;  %v1483_v22 = vld [vmem:[%s4044_s15] sm:$0xff]  ;;  %2985 = vmatpush3.bf16.msra.mxu1 %v2982_v17 }
 0x5b6   :  { %v775_v25 = vsel %vm771_vm6, %v763_v21, %v773_v23  ;;  %v2986_v21 = vpack.c.bf16 %v1989_v19, %v1988_v18  ;;  %v1990_v23 = vld [vmem:[%s4068_s7 + $0xc0] sm:$0xff]  ;;  %2624 = vmatprep.mubr.msk.f32.mxu1 %vm1050_vm7, %v1483_v22  ;;  %v2510_v18 = vpop.f32.mrb[8].mxu1  ;;  %vm1582_vm2 = vcmp.lt.s32.totalorder %v3753_v16, %v1580_v10 }
 0x5b7   :  { %v2844_v28 = vpack.c.bf16 %v776_v24, %v775_v25  ;;  %v1991_v24 = vld [vmem:[%s4068_s7 + $0xc8] sm:$0xff]  ;;  %v1123_v20 = vpop.f32.mrb[9].mxu1 }
 0x5b8   :  { %2987 = vmatprep.subr.bf16.mxu1 %v2986_v21  ;;  %v2990_v25 = vpack.c.bf16 %v1991_v24, %v1990_v23 }
 0x5b9   :  { %2845 = vmatpush3.bf16.msra.mxu0 %v2844_v28  ;;  %2989 = vmatpush3.bf16.msra.mxu1 %v2986_v21  ;;  %v2994_v28 = vpack.c.bf16 %v1993_v27, %v1992_v26  ;;  %v1133_v21 = vstv %s1132_s6 }
 0x5ba   :  { %2846 = vmatprep.subr.bf16.mxu0 %v3175_v32  ;;  %2991 = vmatprep.subr.bf16.mxu1 %v2990_v25  ;;  %vm1136_vm9 = vcmp.lt.s32.totalorder %v3753_v16, %v1133_v21 }
 0x5bb   :  { %v1138_v23 = vsel %vm1136_vm9, %v1123_v20, -3.4028235e+38 }
 0x5bc   :  { %2416 = vmatmul.mubr.msk.f32.vlgmr.msra.gmra.mrb[6].mxu0 %vm241_vm0, %v777_v29  ;;  %v1994_v29 = vld [vmem:[%s4068_s7 + $0xe0] sm:$0xff] }
 0x5bd   :  { %2848 = vmatpush3.bf16.msra.mxu0 %v2847_v30  ;;  %2450 = vmatprep.mubr.msk.f32.mxu0 %vm3176_vm1, %v3177_v33  ;;  %v1995_v30 = vld [vmem:[%s4068_s7 + $0xe8] sm:$0xff] }
 0x5be   :  { %2849 = vmatprep.subr.bf16.mxu0 %v3175_v32  ;;  %2993 = vmatpush3.bf16.msra.mxu1 %v2990_v25  ;;  %v2998_v31 = vpack.c.bf16 %v1995_v30, %v1994_v29  ;;  %v1140_v25 = vrot.slane %v1138_v23, 4 }
 0x5bf   :  { %2995 = vmatprep.subr.bf16.mxu1 %v2994_v28 }
 0x5c0   :  { %v1141_v27 = vmax.f32 %v1138_v23, %v1140_v25 }
 0x5c1   :  { %2851 = vmatpush3.bf16.msra.mxu0 %v2850_v35  ;;  %v2002_v35 = vld [vmem:[%s4068_s7 + $0xf8] sm:$0xff] }
 0x5c2   :  { %2852 = vmatprep.subr.bf16.mxu0 %v3175_v32  ;;  %2997 = vmatpush3.bf16.msra.mxu1 %v2994_v28  ;;  %v3026_v36 = vpack.c.bf16 %v2002_v35, %v2001_v34  ;;  %v1142_v29 = vrot.slane %v1141_v27, 2  ;;  %v1970_v34 = vld [vmem:[%s4067_s3 + $0x2] ss:$0 sm:$0xff] }
 0x5c3   :  { %2999 = vmatprep.subr.bf16.mxu1 %v2998_v31 }
 0x5c5   :  { %2854 = vmatpush3.bf16.msra.mxu0 %v2853_v38  ;;  %v2004_v38 = vld [vmem:[%s4068_s7 + $0x108] sm:$0xff]  ;;  %s1968_s7 = sld [smem:[#allocation6 + $0x1]] }
 0x5c6   :  { %2855 = vmatprep.subr.bf16.mxu0 %v3175_v32  ;;  %3001 = vmatpush3.bf16.msra.mxu1 %v2998_v31  ;;  %v3030_v40 = vpack.c.bf16 %v2004_v38, %v2003_v37  ;;  %v1143_v31 = vmax.f32 %v1141_v27, %v1142_v29 }
 0x5c7   :  { %3027 = vmatprep.subr.bf16.mxu1 %v3026_v36 }
 0x5c9   :  { %2857 = vmatpush3.bf16.msra.mxu0 %v2856_v41  ;;  %v1705_v41 = vld [vmem:[%s4045_s16] sm:$0xff]  ;;  %2625 = vmatmul.mubr.msk.f32.vlgmr.msra.gmra.mrb[12].mxu1 %vm1050_vm7, %v1484_v39  ;;  %s1983_s16 = sld [smem:[#allocation7 + $0x1]] }
 0x5ca   :  { %2858 = vmatprep.subr.bf16.mxu0 %v3175_v32  ;;  %3029 = vmatpush3.bf16.msra.mxu1 %v3026_v36  ;;  %v1144_v36 = vrot.slane %v1143_v31, 1 }
 0x5cb   :  { %2682 = vmatprep.mubr.msk.f32.mxu1 %vm1050_vm7, %v1705_v41  ;;  %3031 = vmatprep.subr.bf16.mxu1 %v3030_v40  ;;  %v1135_v17 = vstv %s1968_s7 }
 0x5cc   :  { %vm1137_vm8 = vcmp.lt.s32.totalorder %v3753_v16, %v1135_v17  ;;  %v1145_v38 = vmax.f32 %v1143_v31, %v1144_v36 }
 0x5cd   :  { %2860 = vmatpush3.bf16.msra.mxu0 %v2859_v44  ;;  %v3034_v44 = vpack.c.bf16 %v2006_v43, %v2005_v42  ;;  %v1139_v19 = vsel %vm1137_vm8, %v2510_v18, -3.4028235e+38 }
 0x5ce   :  { %2861 = vmatprep.subr.bf16.mxu0 %v3175_v32  ;;  %3033 = vmatpush3.bf16.msra.mxu1 %v3030_v40  ;;  %v1146_v22 = vrot.slane %v1139_v19, 4  ;;  %v1160_v40 = vadd.f32 %v1970_v34, %v1145_v38 }
 0x5cf   :  { %3035 = vmatprep.subr.bf16.mxu1 %v3034_v44 }
 0x5d0   :  { %v1147_v24 = vmax.f32 %v1139_v19, %v1146_v22  ;;  %v1164_v41 = vmul.f32 0.01, %v1160_v40  ;;  %vm1162_vm11 = vcmp.ge.f32.partialorder %v1160_v40, 0.0 }
 0x5d1   :  { %2863 = vmatpush3.bf16.msra.mxu0 %v2862_v47  ;;  %v3038_v47 = vpack.c.bf16 %v2008_v46, %v2007_v45  ;;  %v1358_v46 = vstv %s1983_s16 }
 0x5d2   :  { %2864 = vmatprep.subr.bf16.mxu0 %v3175_v32  ;;  %3037 = vmatpush3.bf16.msra.mxu1 %v3034_v44  ;;  %v1148_v26 = vrot.slane %v1147_v24, 2  ;;  %v1166_v44 = vsel %vm1162_vm11, %v1160_v40, %v1164_v41  ;;  %vm1360_vm13 = vcmp.lt.s32.totalorder %v3753_v16, %v1358_v46  ;;  %v1802_v40 = vstv %s2013_s12 }
 0x5d3   :  { %3039 = vmatprep.subr.bf16.mxu1 %v3038_v47  ;;  %vm1804_vm6 = vcmp.lt.s32.totalorder %v3753_v16, %v1802_v40  ;;  %v1392_v40 = vld [vmem:[%s4066_s4 + $0x188] sm:$0xff] }
 0x5d4   :  { %v1149_v28 = vmax.f32 %v1147_v24, %v1148_v26  ;;  %v2000_v26 = vld [vmem:[%s4067_s3 + $0x4] ss:$0 sm:$0xff] }
 0x5d5   :  { %2866 = vmatpush3.bf16.msra.mxu0 %v2865_v50  ;;  %v3042_v50 = vpack.c.bf16 %v2010_v49, %v2009_v48 }
 0x5d6   :  { %2867 = vmatprep.subr.bf16.mxu0 %v3175_v32  ;;  %3041 = vmatpush3.bf16.msra.mxu1 %v3038_v47  ;;  %v1150_v30 = vrot.slane %v1149_v28, 1 }
 0x5d7   :  { %3043 = vmatprep.subr.bf16.mxu1 %v3042_v50 }
 0x5d8   :  { %v1151_v35 = vmax.f32 %v1149_v28, %v1150_v30 }
 0x5d9   :  { %2869 = vmatpush3.bf16.msra.mxu0 %v2868_v53  ;;  %v950_v53 = vld [vmem:[%s4066_s4 + $0x88] sm:$0xff] }
 0x5da   :  { %2870 = vmatprep.subr.bf16.mxu0 %v3175_v32  ;;  %3045 = vmatpush3.bf16.msra.mxu1 %v3042_v50  ;;  %v2871_v54 = vpack.c.bf16 %v950_v53, %v949_v52  ;;  %v1161_v37 = vadd.f32 %v1970_v34, %v1151_v35  ;;  %v1356_v50 = vstv %s1355_s23 }
 0x5db   :  { %vm1359_vm14 = vcmp.lt.s32.totalorder %v3753_v16, %v1356_v50 }
 0x5dc   :  { %v1165_v39 = vmul.f32 0.01, %v1161_v37  ;;  %vm1163_vm10 = vcmp.ge.f32.partialorder %v1161_v37, 0.0 }
 0x5dd   :  { %2683 = vmatmul.mubr.msk.f32.vlgmr.msra.gmra.mrb[14].mxu1 %vm1050_vm7, %v1706_v51 }
 0x5de   :  { %v1167_v42 = vsel %vm1163_vm10, %v1161_v37, %v1165_v39 }
 0x5df   :  { %v1186_v43 = vrot.slane %v1167_v42, 7 }
 0x5e1   :  { %v3761_v45 = vsel %vm1187_vm12, %v1186_v43, %v1166_v44  ;;  %v1800_v44 = vstv %s1799_s27 }
 0x5e2   :  { %vm1803_vm7 = vcmp.lt.s32.totalorder %v3753_v16, %v1800_v44 }
 0x686   :  { %v2568_v47 = vpop.f32.mrb[10].mxu1 }
 0x687   :  { %v1362_v48 = vsel %vm1360_vm13, %v2568_v47, -3.4028235e+38  ;;  %v1346_v49 = vpop.f32.mrb[11].mxu1 }
 0x688   :  { %v1369_v51 = vrot.slane %v1362_v48, 4  ;;  %v1361_v52 = vsel %vm1359_vm14, %v1346_v49, -3.4028235e+38 }
 0x68a   :  { %v1370_v53 = vmax.f32 %v1362_v48, %v1369_v51 }
 0x68c   :  { %v1371_v55 = vrot.slane %v1370_v53, 2 }
 0x68f   :  { %v847_v57 = vpop.f32.mrb[6].mxu0 }
 0x690   :  { %v2417_v58 = vpop.f32.mrb[7].mxu0  ;;  %2451 = vmatmul.mubr.f32.vlgmr.msra.gmra.mrb[8].mxu0 %v847_v57  ;;  %v1372_v57 = vmax.f32 %v1370_v53, %v1371_v55 }
 0x691   :  { %2872 = vmatpush3.bf16.msra.mxu0 %v2871_v54  ;;  %2485 = vmatprep.mubr.msk.f32.mxu0 %vm3176_vm1, %v3177_v33  ;;  %v1363_v54 = vrot.slane %v1361_v52, 4 }
 0x692   :  { %2873 = vmatprep.subr.bf16.mxu0 %v3175_v32 }
 0x693   :  { %v1364_v56 = vmax.f32 %v1361_v52, %v1363_v54 }
 0x695   :  { %2875 = vmatpush3.bf16.msra.mxu0 %v2874_v59  ;;  %v1365_v58 = vrot.slane %v1364_v56, 2  ;;  %v1373_v59 = vrot.slane %v1372_v57, 1 }
 0x696   :  { %2876 = vmatprep.subr.bf16.mxu0 %v3175_v32 }
 0x697   :  { %v1366_v60 = vmax.f32 %v1364_v56, %v1365_v58  ;;  %v2015_v56 = vld [vmem:[%s4067_s3 + $0x5] ss:$0 sm:$0xff] }
 0x699   :  { %2878 = vmatpush3.bf16.msra.mxu0 %v2877_v62  ;;  %v1374_v62 = vmax.f32 %v1372_v57, %v1373_v59  ;;  %v1367_v63 = vrot.slane %v1366_v60, 1 }
 0x69a   :  { %2879 = vmatprep.subr.bf16.mxu0 %v3175_v32 }
 0x69b   :  { %v1384_v0 = vadd.f32 %v1985_v61, %v1374_v62 }
 0x69d   :  { %2881 = vmatpush3.bf16.msra.mxu0 %v2880_v1  ;;  %v1368_v1 = vmax.f32 %v1366_v60, %v1367_v63  ;;  %v1388_v3 = vmul.f32 0.01, %v1384_v0  ;;  %vm1386_vm15 = vcmp.ge.f32.partialorder %v1384_v0, 0.0 }
 0x69e   :  { %2882 = vmatprep.subr.bf16.mxu0 %v3175_v32 }
 0x69f   :  { %v1383_v4 = vadd.f32 %v1985_v61, %v1368_v1  ;;  %v1390_v6 = vsel %vm1386_vm15, %v1384_v0, %v1388_v3 }
 0x6a0   :  { %v1409_v7 = vrot.slane %v1390_v6, 7  ;;  %v1168_v6 = vld [vmem:[%s4066_s4 + $0x100] sm:$0xff] }
 0x6a1   :  { %2884 = vmatpush3.bf16.msra.mxu0 %v2883_v5  ;;  %v1387_v5 = vmul.f32 0.01, %v1383_v4  ;;  %vm1385_vm0 = vcmp.ge.f32.partialorder %v1383_v4, 0.0 }
 0x6a2   :  { %2885 = vmatprep.subr.bf16.mxu0 %v3175_v32 }
 0x6a5   :  { %2887 = vmatpush3.bf16.msra.mxu0 %v2886_v8  ;;  %v1389_v8 = vsel %vm1385_vm0, %v1383_v4, %v1387_v5  ;;  %v1965_v4 = vld [vmem:[%s4067_s3 + $0x1] ss:$0 sm:$0xff] }
 0x6a6   :  { %2888 = vmatprep.subr.bf16.mxu0 %v3175_v32  ;;  %v3769_v9 = vsel %vm1187_vm12, %v1409_v7, %v1389_v8  ;;  %v1169_v7 = vld [vmem:[%s4066_s4 + $0x108] sm:$0xff] }
 0x6a9   :  { %2890 = vmatpush3.bf16.msra.mxu0 %v2889_v11  ;;  %v2626_v11 = vpop.f32.mrb[12].mxu1 }
 0x6aa   :  { %2891 = vmatprep.subr.bf16.mxu0 %v3175_v32  ;;  %v1584_v12 = vsel %vm1582_vm2, %v2626_v11, -3.4028235e+38  ;;  %v1568_v13 = vpop.f32.mrb[13].mxu1 }
 0x6ab   :  { %v1591_v15 = vrot.slane %v1584_v12, 4 }
 0x6ad   :  { %2893 = vmatpush3.bf16.msra.mxu0 %v2892_v14  ;;  %v1578_v14 = vstv %s1577_s9  ;;  %v1592_v18 = vmax.f32 %v1584_v12, %v1591_v15  ;;  %v2915_v12 = vpack.c.bf16 %v1169_v7, %v1168_v6  ;;  %v1617_v6 = vld [vmem:[%s4066_s4 + $0x220] sm:$0xff]  ;;  %v1618_v7 = vld [vmem:[%s4066_s4 + $0x228] sm:$0xff] }
 0x6ae   :  { %2914 = vmatprep.subr.bf16.mxu0 %v3175_v32  ;;  %vm1581_vm3 = vcmp.lt.s32.totalorder %v3753_v16, %v1578_v14  ;;  %v1171_v14 = vld [vmem:[%s4066_s4 + $0x118] sm:$0xff] }
 0x6af   :  { %v1583_v17 = vsel %vm1581_vm3, %v1568_v13, -3.4028235e+38  ;;  %v1593_v20 = vrot.slane %v1592_v18, 2  ;;  %v1170_v13 = vld [vmem:[%s4066_s4 + $0x110] sm:$0xff] }
 0x6b0   :  { %v1585_v19 = vrot.slane %v1583_v17, 4  ;;  %v2684_v41 = vpop.f32.mrb[14].mxu1 }
 0x6b1   :  { %v1594_v22 = vmax.f32 %v1592_v18, %v1593_v20  ;;  %v1806_v42 = vsel %vm1804_vm6, %v2684_v41, -3.4028235e+38  ;;  %v1790_v43 = vpop.f32.mrb[15].mxu1  ;;  %v1172_v18 = vld [vmem:[%s4066_s4 + $0x120] sm:$0xff] }
 0x6b2   :  { %v1586_v21 = vmax.f32 %v1583_v17, %v1585_v19  ;;  %v1813_v46 = vrot.slane %v1806_v42, 4  ;;  %v1805_v47 = vsel %vm1803_vm7, %v1790_v43, -3.4028235e+38  ;;  %v2918_v17 = vpack.c.bf16 %v1171_v14, %v1170_v13  ;;  %v1173_v19 = vld [vmem:[%s4066_s4 + $0x128] sm:$0xff]  ;;  %v1394_v43 = vld [vmem:[%s4066_s4 + $0x198] sm:$0xff] }
 0x6b3   :  { %v1595_v24 = vrot.slane %v1594_v22, 1  ;;  %v1807_v49 = vrot.slane %v1805_v47, 4  ;;  %v2921_v20 = vpack.c.bf16 %v1173_v19, %v1172_v18  ;;  %v1622_v13 = vld [vmem:[%s4066_s4 + $0x248] sm:$0xff]  ;;  %v1625_v19 = vld [vmem:[%s4066_s4 + $0x260] sm:$0xff] }
 0x6b4   :  { %v1587_v23 = vrot.slane %v1586_v21, 2  ;;  %v1814_v48 = vmax.f32 %v1806_v42, %v1813_v46  ;;  %v1393_v42 = vld [vmem:[%s4066_s4 + $0x190] sm:$0xff]  ;;  %v1395_v46 = vld [vmem:[%s4066_s4 + $0x1a0] sm:$0xff] }
 0x6b5   :  { %v1596_v27 = vmax.f32 %v1594_v22, %v1595_v24  ;;  %v1808_v51 = vmax.f32 %v1805_v47, %v1807_v49  ;;  %v1175_v22 = vld [vmem:[%s4066_s4 + $0x138] sm:$0xff]  ;;  %v1176_v24 = vld [vmem:[%s4066_s4 + $0x140] sm:$0xff]  ;;  %v2962_v44 = vpack.c.bf16 %v1394_v43, %v1393_v42  ;;  %v1396_v47 = vld [vmem:[%s4066_s4 + $0x1a8] sm:$0xff] }
 0x6b6   :  { %v1588_v25 = vmax.f32 %v1586_v21, %v1587_v23  ;;  %v1815_v50 = vrot.slane %v1814_v48, 2  ;;  %v1174_v21 = vld [vmem:[%s4066_s4 + $0x130] sm:$0xff]  ;;  %v1398_v49 = vld [vmem:[%s4066_s4 + $0x1b8] sm:$0xff] }
 0x6b7   :  { %v1606_v29 = vadd.f32 %v2000_v26, %v1596_v27  ;;  %v1809_v53 = vrot.slane %v1808_v51, 2  ;;  %v2924_v23 = vpack.c.bf16 %v1175_v22, %v1174_v21  ;;  %v1178_v27 = vld [vmem:[%s4066_s4 + $0x150] sm:$0xff]  ;;  %v1846_v42 = vld [vmem:[%s4066_s4 + $0x2d8] sm:$0xff] }
 0x6b8   :  { %v1589_v28 = vrot.slane %v1588_v25, 1  ;;  %v1816_v52 = vmax.f32 %v1814_v48, %v1815_v50  ;;  %v2965_v48 = vpack.c.bf16 %v1396_v47, %v1395_v46  ;;  %v1627_v22 = vld [vmem:[%s4066_s4 + $0x270] sm:$0xff]  ;;  %v1848_v46 = vld [vmem:[%s4066_s4 + $0x2e8] sm:$0xff] }
 0x6b9   :  { %v1610_v31 = vmul.f32 0.01, %v1606_v29  ;;  %vm1608_vm4 = vcmp.ge.f32.partialorder %v1606_v29, 0.0  ;;  %v1810_v55 = vmax.f32 %v1808_v51, %v1809_v53  ;;  %v1399_v51 = vld [vmem:[%s4066_s4 + $0x1c0] sm:$0xff] }
 0x6ba   :  { %v1590_v30 = vmax.f32 %v1588_v25, %v1589_v28  ;;  %v1817_v54 = vrot.slane %v1816_v52, 1  ;;  %v1177_v25 = vld [vmem:[%s4066_s4 + $0x148] sm:$0xff]  ;;  %v1179_v28 = vld [vmem:[%s4066_s4 + $0x158] sm:$0xff] }
 0x6bb   :  { %v1612_v36 = vsel %vm1608_vm4, %v1606_v29, %v1610_v31  ;;  %v1811_v58 = vrot.slane %v1810_v55, 1  ;;  %v2930_v29 = vpack.c.bf16 %v1179_v28, %v1178_v27  ;;  %v1181_v31 = vld [vmem:[%s4066_s4 + $0x168] sm:$0xff]  ;;  %v1837_v28 = vld [vmem:[%s4066_s4 + $0x290] sm:$0xff] }
 0x6bc   :  { %v1605_v34 = vadd.f32 %v2000_v26, %v1590_v30  ;;  %v1631_v37 = vrot.slane %v1612_v36, 7  ;;  %v1818_v57 = vmax.f32 %v1816_v52, %v1817_v54  ;;  %v2927_v26 = vpack.c.bf16 %v1177_v25, %v1176_v24  ;;  %v1180_v30 = vld [vmem:[%s4066_s4 + $0x160] sm:$0xff]  ;;  %v1183_v36 = vld [vmem:[%s4066_s4 + $0x178] sm:$0xff]  ;;  %v1400_v52 = vld [vmem:[%s4066_s4 + $0x1c8] sm:$0xff] }
 0x6bd   :  { %v1812_v60 = vmax.f32 %v1810_v55, %v1811_v58  ;;  %v2971_v53 = vpack.c.bf16 %v1400_v52, %v1399_v51  ;;  %v1401_v54 = vld [vmem:[%s4066_s4 + $0x1d0] sm:$0xff]  ;;  %v1402_v55 = vld [vmem:[%s4066_s4 + $0x1d8] sm:$0xff]  ;;  %v1404_v58 = vld [vmem:[%s4066_s4 + $0x1e8] sm:$0xff] }
 0x6be   :  { %v1609_v35 = vmul.f32 0.01, %v1605_v34  ;;  %vm1607_vm5 = vcmp.ge.f32.partialorder %v1605_v34, 0.0  ;;  %v1828_v59 = vadd.f32 %v2015_v56, %v1818_v57  ;;  %v1403_v57 = vld [vmem:[%s4066_s4 + $0x1e0] sm:$0xff] }
 0x6bf   :  { %v1827_v62 = vadd.f32 %v2015_v56, %v1812_v60  ;;  %v2974_v56 = vpack.c.bf16 %v1402_v55, %v1401_v54  ;;  %v1405_v60 = vld [vmem:[%s4066_s4 + $0x1f0] sm:$0xff]  ;;  %v1835_v25 = vld [vmem:[%s4066_s4 + $0x280] sm:$0xff] }
 0x6c0   :  { %v1611_v38 = vsel %vm1607_vm5, %v1605_v34, %v1609_v35  ;;  %v1832_v61 = vmul.f32 0.01, %v1828_v59  ;;  %vm1830_vm8 = vcmp.ge.f32.partialorder %v1828_v59, 0.0  ;;  %v2933_v34 = vpack.c.bf16 %v1181_v31, %v1180_v30  ;;  %v1182_v35 = vld [vmem:[%s4066_s4 + $0x170] sm:$0xff]  ;;  %v1839_v31 = vld [vmem:[%s4066_s4 + $0x2a0] sm:$0xff] }
 0x6c1   :  { %v3777_v39 = vsel %vm1187_vm12, %v1631_v37, %v1611_v38  ;;  %v1831_v16 = vmul.f32 0.01, %v1827_v62  ;;  %vm1829_vm9 = vcmp.ge.f32.partialorder %v1827_v62, 0.0  ;;  %v2936_v37 = vpack.c.bf16 %v1183_v36, %v1182_v35  ;;  %v1391_v38 = vld [vmem:[%s4066_s4 + $0x180] sm:$0xff] }
 0x6c2   :  { %v1834_v63 = vsel %vm1830_vm8, %v1828_v59, %v1832_v61  ;;  %v2959_v41 = vpack.c.bf16 %v1392_v40, %v1391_v38  ;;  %v2977_v59 = vpack.c.bf16 %v1404_v58, %v1403_v57  ;;  %v1406_v61 = vld [vmem:[%s4066_s4 + $0x1f8] sm:$0xff]  ;;  %v1844_v38 = vld [vmem:[%s4066_s4 + $0x2c8] sm:$0xff] }
 0x6c3   :  { %v1853_v0 = vrot.slane %v1834_v63, 7  ;;  %v1833_v1 = vsel %vm1829_vm9, %v1827_v62, %v1831_v16  ;;  %v2980_v62 = vpack.c.bf16 %v1406_v61, %v1405_v60  ;;  %v1613_v16 = vld [vmem:[%s4066_s4 + $0x200] sm:$0xff]  ;;  %v1614_v63 = vld [vmem:[%s4066_s4 + $0x208] sm:$0xff] }
 0x6c5   :  { %v3785_v3 = vsel %vm1187_vm12, %v1853_v0, %v1833_v1  ;;  %v3003_v0 = vpack.c.bf16 %v1614_v63, %v1613_v16  ;;  %v1615_v1 = vld [vmem:[%s4066_s4 + $0x210] sm:$0xff] }
 0x763   :  { %v942_v5 = vpop.f32.mrb[8].mxu0 }
 0x764   :  { %v943_v8 = vadd.f32 %v1965_v4, %v942_v5  ;;  %v2452_v10 = vpop.f32.mrb[9].mxu0  ;;  %v1616_v4 = vld [vmem:[%s4066_s4 + $0x218] sm:$0xff] }
 0x765   :  { %v3006_v5 = vpack.c.bf16 %v1616_v4, %v1615_v1  ;;  %v1620_v10 = vld [vmem:[%s4066_s4 + $0x238] sm:$0xff] }
 0x766   :  { %vm946_vm10 = vcmp.ge.f32.partialorder %v943_v8, 0.0  ;;  %v947_v11 = vmul.f32 0.01, %v943_v8 }
 0x768   :  { %v948_v15 = vsel %vm946_vm10, %v943_v8, %v947_v11  ;;  %v3009_v8 = vpack.c.bf16 %v1618_v7, %v1617_v6 }
 0x769   :  { %2486 = vmatmul.mubr.f32.vlgmr.msra.gmra.mrb[10].mxu0 %v948_v15  ;;  %v1623_v15 = vld [vmem:[%s4066_s4 + $0x250] sm:$0xff] }
 0x76a   :  { %2916 = vmatpush3.bf16.msra.mxu0 %v2915_v12  ;;  %2543 = vmatprep.mubr.msk.f32.mxu0 %vm3176_vm1, %v3177_v33  ;;  %v1621_v12 = vld [vmem:[%s4066_s4 + $0x240] sm:$0xff] }
 0x76b   :  { %2917 = vmatprep.subr.bf16.mxu0 %v3175_v32  ;;  %v3015_v14 = vpack.c.bf16 %v1622_v13, %v1621_v12 }
 0x76e   :  { %2919 = vmatpush3.bf16.msra.mxu0 %v2918_v17  ;;  %v1624_v17 = vld [vmem:[%s4066_s4 + $0x258] sm:$0xff] }
 0x76f   :  { %2920 = vmatprep.subr.bf16.mxu0 %v3175_v32  ;;  %v3018_v18 = vpack.c.bf16 %v1624_v17, %v1623_v15 }
 0x772   :  { %2922 = vmatpush3.bf16.msra.mxu0 %v2921_v20  ;;  %v1626_v20 = vld [vmem:[%s4066_s4 + $0x268] sm:$0xff] }
 0x773   :  { %2923 = vmatprep.subr.bf16.mxu0 %v3175_v32  ;;  %v3021_v21 = vpack.c.bf16 %v1626_v20, %v1625_v19 }
 0x776   :  { %2925 = vmatpush3.bf16.msra.mxu0 %v2924_v23  ;;  %v1628_v23 = vld [vmem:[%s4066_s4 + $0x278] sm:$0xff] }
 0x777   :  { %2926 = vmatprep.subr.bf16.mxu0 %v3175_v32  ;;  %v3024_v24 = vpack.c.bf16 %v1628_v23, %v1627_v22 }
 0x77a   :  { %2928 = vmatpush3.bf16.msra.mxu0 %v2927_v26  ;;  %v1836_v26 = vld [vmem:[%s4066_s4 + $0x288] sm:$0xff] }
 0x77b   :  { %2929 = vmatprep.subr.bf16.mxu0 %v3175_v32  ;;  %v3047_v27 = vpack.c.bf16 %v1836_v26, %v1835_v25 }
 0x77e   :  { %2931 = vmatpush3.bf16.msra.mxu0 %v2930_v29  ;;  %v1838_v29 = vld [vmem:[%s4066_s4 + $0x298] sm:$0xff] }
 0x77f   :  { %2932 = vmatprep.subr.bf16.mxu0 %v3175_v32  ;;  %v3050_v30 = vpack.c.bf16 %v1838_v29, %v1837_v28 }
 0x782   :  { %2934 = vmatpush3.bf16.msra.mxu0 %v2933_v34  ;;  %v1840_v34 = vld [vmem:[%s4066_s4 + $0x2a8] sm:$0xff] }
 0x783   :  { %2935 = vmatprep.subr.bf16.mxu0 %v3175_v32  ;;  %v3053_v35 = vpack.c.bf16 %v1840_v34, %v1839_v31 }
 0x786   :  { %2937 = vmatpush3.bf16.msra.mxu0 %v2936_v37  ;;  %v1843_v37 = vld [vmem:[%s4066_s4 + $0x2c0] sm:$0xff] }
 0x787   :  { %2958 = vmatprep.subr.bf16.mxu0 %v3175_v32  ;;  %v3059_v40 = vpack.c.bf16 %v1844_v38, %v1843_v37 }
 0x789   :  { %2544 = vmatmul.mubr.f32.vlgmr.msra.gmra.mrb[10].mxu0 %v3761_v45  ;;  %v1397_v45 = vld [vmem:[%s4066_s4 + $0x1b0] sm:$0xff] }
 0x78a   :  { %2960 = vmatpush3.bf16.msra.mxu0 %v2959_v41  ;;  %2601 = vmatprep.mubr.msk.f32.mxu0 %vm3176_vm1, %v3177_v33  ;;  %v2968_v50 = vpack.c.bf16 %v1398_v49, %v1397_v45  ;;  %v1845_v41 = vld [vmem:[%s4066_s4 + $0x2d0] sm:$0xff]  ;;  %v1850_v45 = vld [vmem:[%s4066_s4 + $0x2f8] sm:$0xff] }
 0x78b   :  { %2961 = vmatprep.subr.bf16.mxu0 %v3175_v32  ;;  %v3062_v43 = vpack.c.bf16 %v1846_v42, %v1845_v41 }
 0x78e   :  { %2963 = vmatpush3.bf16.msra.mxu0 %v2962_v44  ;;  %v1847_v44 = vld [vmem:[%s4066_s4 + $0x2e0] sm:$0xff] }
 0x78f   :  { %2964 = vmatprep.subr.bf16.mxu0 %v3175_v32  ;;  %v3065_v47 = vpack.c.bf16 %v1848_v46, %v1847_v44 }
 0x792   :  { %2966 = vmatpush3.bf16.msra.mxu0 %v2965_v48  ;;  %v1849_v48 = vld [vmem:[%s4066_s4 + $0x2f0] sm:$0xff] }
 0x793   :  { %2967 = vmatprep.subr.bf16.mxu0 %v3175_v32  ;;  %v3068_v49 = vpack.c.bf16 %v1850_v45, %v1849_v48 }
 0x796   :  { %2969 = vmatpush3.bf16.msra.mxu0 %v2968_v50  ;;  %v1937_v50 = vld [vmem:[#allocation2] ss:$0 sm:$0xff] }
 0x797   :  { %2970 = vmatprep.subr.bf16.mxu0 %v3175_v32  ;;  %v585_v51 = vadd.f32 %v1937_v50, %v3516_v2 }
 0x79a   :  { %2972 = vmatpush3.bf16.msra.mxu0 %v2971_v53 }
 0x79b   :  { %2973 = vmatprep.subr.bf16.mxu0 %v3175_v32 }
 0x79e   :  { %2975 = vmatpush3.bf16.msra.mxu0 %v2974_v56 }
 0x79f   :  { %2976 = vmatprep.subr.bf16.mxu0 %v3175_v32 }
 0x7a2   :  { %2978 = vmatpush3.bf16.msra.mxu0 %v2977_v59 }
 0x7a3   :  { %2979 = vmatprep.subr.bf16.mxu0 %v3175_v32 }
 0x7a6   :  { %2981 = vmatpush3.bf16.msra.mxu0 %v2980_v62 }
 0x7a7   :  { %3002 = vmatprep.subr.bf16.mxu0 %v3175_v32 }
 0x7a9   :  { %2602 = vmatmul.mubr.f32.vlgmr.msra.gmra.mrb[10].mxu0 %v3769_v9  ;;  %v1619_v9 = vld [vmem:[%s4066_s4 + $0x230] sm:$0xff] }
 0x7aa   :  { %3004 = vmatpush3.bf16.msra.mxu0 %v3003_v0  ;;  %2659 = vmatprep.mubr.msk.f32.mxu0 %vm3176_vm1, %v3177_v33  ;;  %v3012_v11 = vpack.c.bf16 %v1620_v10, %v1619_v9 }
 0x7ab   :  { %3005 = vmatprep.subr.bf16.mxu0 %v3175_v32 }
 0x7ae   :  { %3007 = vmatpush3.bf16.msra.mxu0 %v3006_v5 }
 0x7af   :  { %3008 = vmatprep.subr.bf16.mxu0 %v3175_v32 }
 0x7b2   :  { %3010 = vmatpush3.bf16.msra.mxu0 %v3009_v8 }
 0x7b3   :  { %3011 = vmatprep.subr.bf16.mxu0 %v3175_v32 }
 0x7b6   :  { %3013 = vmatpush3.bf16.msra.mxu0 %v3012_v11 }
 0x7b7   :  { %3014 = vmatprep.subr.bf16.mxu0 %v3175_v32 }
 0x7ba   :  { %3016 = vmatpush3.bf16.msra.mxu0 %v3015_v14 }
 0x7bb   :  { %3017 = vmatprep.subr.bf16.mxu0 %v3175_v32 }
 0x7be   :  { %3019 = vmatpush3.bf16.msra.mxu0 %v3018_v18 }
 0x7bf   :  { %3020 = vmatprep.subr.bf16.mxu0 %v3175_v32 }
 0x7c2   :  { %3022 = vmatpush3.bf16.msra.mxu0 %v3021_v21 }
 0x7c3   :  { %3023 = vmatprep.subr.bf16.mxu0 %v3175_v32 }
 0x7c6   :  { %3025 = vmatpush3.bf16.msra.mxu0 %v3024_v24 }
 0x7c7   :  { %3046 = vmatprep.subr.bf16.mxu0 %v3175_v32 }
 0x7c9   :  { %2660 = vmatmul.mubr.f32.vlgmr.msra.gmra.mrb[10].mxu0 %v3777_v39  ;;  %v1841_v39 = vld [vmem:[%s4066_s4 + $0x2b0] sm:$0xff] }
 0x7ca   :  { %3048 = vmatpush3.bf16.msra.mxu0 %v3047_v27  ;;  %2717 = vmatprep.mubr.msk.f32.mxu0 %vm3176_vm1, %v3177_v33  ;;  %v1842_v33 = vld [vmem:[%s4066_s4 + $0x2b8] sm:$0xff]  ;;  %vm1927_vm1 = vcmask 1024  }
 0x7cb   :  { %3049 = vmatprep.subr.bf16.mxu0 %v3175_v32  ;;  %v3056_v36 = vpack.c.bf16 %v1842_v33, %v1841_v39 }
 0x7ce   :  { %3051 = vmatpush3.bf16.msra.mxu0 %v3050_v30 }
 0x7cf   :  { %3052 = vmatprep.subr.bf16.mxu0 %v3175_v32 }
 0x7d2   :  { %3054 = vmatpush3.bf16.msra.mxu0 %v3053_v35 }
 0x7d3   :  { %3055 = vmatprep.subr.bf16.mxu0 %v3175_v32 }
 0x7d6   :  { %3057 = vmatpush3.bf16.msra.mxu0 %v3056_v36 }
 0x7d7   :  { %3058 = vmatprep.subr.bf16.mxu0 %v3175_v32 }
 0x7da   :  { %3060 = vmatpush3.bf16.msra.mxu0 %v3059_v40 }
 0x7db   :  { %3061 = vmatprep.subr.bf16.mxu0 %v3175_v32 }
 0x7de   :  { %3063 = vmatpush3.bf16.msra.mxu0 %v3062_v43 }
 0x7df   :  { %3064 = vmatprep.subr.bf16.mxu0 %v3175_v32 }
 0x7e2   :  { %3066 = vmatpush3.bf16.msra.mxu0 %v3065_v47 }
 0x7e3   :  { %3067 = vmatprep.subr.bf16.mxu0 %v3175_v32 }
 0x7e6   :  { %3069 = vmatpush3.bf16.msra.mxu0 %v3068_v49 }
 0x7e9   :  { %2718 = vmatmul.mubr.f32.vlgmr.msra.gmra.mrb[10].mxu0 %v3785_v3 }
 0x8bc   :  { %v1922_v52 = vpop.f32.mrb[10].mxu0 }
 0x8bd   :  { %v3071_v53 = vadd.f32 %v1922_v52, %v585_v51  ;;  %v2719_v54 = vpop.f32.mrb[11].mxu0 }
 0x8bf   :  { %1928 = vst.msk [vmem:[%s4050_s21] sm:$0x3] %vm1927_vm1, %v3071_v53 }
 0x8c0   :  { %1933 = vsyncpa [#allocation4], 1 }
 0x8c1   :  { %1934 = vsyncpa [#allocation5], 1 }
 0x8c2   :  { %1935 = vsyncpa [#allocation8], 1 }
 0x8c3   :  { %1936 = vsyncpa [#allocation11], 1 }

</bundles_post_ra>
